<compile_context>
chip_gen: v6e
topology: v6e:2x2x1
jax: 0.10.0
libtpu: 0.0.40
codegen_flags: <defaults>
</compile_context>

<pallas_src>
import jax
import jax.numpy as jnp
from jax.experimental import pallas as pl
from jax.experimental.pallas import tpu as pltpu


def _attention_kernel(feats_ref, cluster_ref, key_ref, w_ref, vec_ref, out_ref):
    f32 = jnp.float32
    feats = feats_ref[...]        # (BT, N, F)
    cluster = cluster_ref[...]    # (BT, C, F)
    key = key_ref[...]            # (BT, H)
    BT, N, F = feats.shape
    C = cluster.shape[1]
    A = w_ref.shape[2]

    wh_t = w_ref[0]               # (H, A)  pre-transposed in wrapper
    wv_t = w_ref[1]               # (F, A)
    wh2_t = w_ref[2]              # (H, A)
    wv2_t = w_ref[3]              # (F, A)
    bias1 = vec_ref[0:1, :]       # (1, A) = wh_b + wv_b   (f32)
    bias2 = vec_ref[1:2, :]       # (1, A) = wh2_b + wv2_b (f32)
    wa = vec_ref[2:3, :]          # (1, A) (f32)
    wa2 = vec_ref[3:4, :]         # (1, A) (f32)

    # ---------------- stage 1: attend over feats with `key` ----------------
    # MXU GEMMs with M = BT*N and M = BT (f32 accumulation).
    v = jnp.dot(feats.reshape(BT * N, F), wv_t,
                preferred_element_type=f32).reshape(BT, N, A)
    h = jnp.dot(key, wh_t, preferred_element_type=f32)        # (BT, A)
    act = jnp.tanh(v + h[:, None, :] + bias1[None, :, :])     # (BT, N, A), f32

    # Scores on VPU (multiply) + XLU (lane reduction over A); no M=1 matmul.
    scores = jnp.sum(act * wa[None, :, :], axis=-1)            # (BT, N)
    m = jnp.max(scores, axis=-1, keepdims=True)
    p = jnp.exp(scores - m)
    alpha = p / jnp.sum(p, axis=-1, keepdims=True)             # exact softmax

    # Attention-apply as broadcast-multiply + sublane reduction over N.
    att = jnp.sum(alpha[:, :, None] * feats.astype(f32), axis=1)   # (BT, F)

    # ---------------- stage 2: attend over cluster_feats with att ----------
    v2 = jnp.dot(cluster.reshape(BT * C, F), wv2_t,
                 preferred_element_type=f32).reshape(BT, C, A)
    h2 = jnp.dot(att.astype(wh2_t.dtype), wh2_t,
                 preferred_element_type=f32)                   # (BT, A); needs F == H
    act2 = jnp.tanh(v2 + h2[:, None, :] + bias2[None, :, :])   # (BT, C, A), f32

    scores2 = jnp.sum(act2 * wa2[None, :, :], axis=-1)          # (BT, C)
    m2 = jnp.max(scores2, axis=-1, keepdims=True)
    p2 = jnp.exp(scores2 - m2)
    alpha2 = p2 / jnp.sum(p2, axis=-1, keepdims=True)

    att2 = jnp.sum(alpha2[:, :, None] * cluster.astype(f32), axis=1)  # (BT, F)

    out_ref[...] = (att + att2).astype(out_ref.dtype)


def my_attention(feats, cluster_feats, key, params, *, block_b=32,
                 mxu_dtype=None):
    """feats: (B, N, F), cluster_feats: (B, C, F), key: (B, H) -> (B, F).

    block_b: batch tile; pick so bt*N ~= 128 (v5e) / 256 (v6e/v7x) while
             keeping >= 2 grid steps (v7x has 2 TensorCores).
    mxu_dtype: set to jnp.bfloat16 on v6e/v7x to halve HBM traffic for the
             feats/cluster/weight streams; softmax/tanh math stays f32.
    """
    B, N, F = feats.shape
    _, C, _ = cluster_feats.shape
    _, H = key.shape
    A = params["wh_w"].shape[0]
    # forward() feeds att_feats (F features) into wh2 (Linear(H, A)):
    assert F == H, "MYAttention.forward requires feat_size == hidden_size"

    out_dtype = feats.dtype

    # Pack weights once: (4, F, A) pre-transposed matrices + (4, A) rows
    # {wh_b+wv_b, wh2_b+wv2_b, wa, wa2}.  Constant index_maps -> VMEM-resident.
    w_packed = jnp.stack([params["wh_w"].T, params["wv_w"].T,
                          params["wh2_w"].T, params["wv2_w"].T], axis=0)
    vec_packed = jnp.concatenate(
        [params["wh_b"] + params["wv_b"],
         params["wh2_b"] + params["wv2_b"],
         params["wa_w"], params["wa2_w"]], axis=0).astype(jnp.float32)

    if mxu_dtype is not None:
        feats = feats.astype(mxu_dtype)
        cluster_feats = cluster_feats.astype(mxu_dtype)
        key = key.astype(mxu_dtype)
        w_packed = w_packed.astype(mxu_dtype)
        # vec_packed (biases / wa rows) stays f32: VPU/EUP math is f32-only on v5e.

    # Batch tile: keep it a multiple of 8 (sublane alignment of the 2-D
    # key/out blocks) unless it covers the whole batch.  No jnp.pad: Pallas
    # masks the partial last tile.
    bt = max(1, min(block_b, B))
    if bt < B:
        bt = min(max(8, (bt // 8) * 8), B)
    grid = (pl.cdiv(B, bt),)

    # VMEM budget (double-buffered tiles + resident weights); only set an
    # explicit limit when the 32 MiB scoped default would be exceeded.
    # Cap at 48 MiB so it still fits v7x's 64 MiB physical VMEM.
    in_isz = feats.dtype.itemsize
    tile_bytes = bt * ((N + C) * F + H) * in_isz + bt * F * jnp.dtype(out_dtype).itemsize
    resident_bytes = 4 * F * A * w_packed.dtype.itemsize + 4 * A * 4
    vmem_needed = 2 * tile_bytes + 2 * resident_bytes + (4 << 20)
    vmem_limit = int(min(vmem_needed, 48 << 20)) if vmem_needed > (32 << 20) else None

    grid_spec = pltpu.PrefetchScalarGridSpec(
        num_scalar_prefetch=0,
        grid=grid,
        in_specs=[
            pl.BlockSpec((bt, N, F), lambda b: (b, 0, 0)),   # feats tile
            pl.BlockSpec((bt, C, F), lambda b: (b, 0, 0)),   # cluster tile
            pl.BlockSpec((bt, H), lambda b: (b, 0)),         # key tile
            pl.BlockSpec((4, F, A), lambda b: (0, 0, 0)),    # packed weights
            pl.BlockSpec((4, A), lambda b: (0, 0)),          # packed bias/wa rows
        ],
        out_specs=pl.BlockSpec((bt, F), lambda b: (b, 0)),   # lane-dense output slab
    )

    out = pl.pallas_call(
        _attention_kernel,
        out_shape=jax.ShapeDtypeStruct((B, F), out_dtype),
        grid_spec=grid_spec,
        compiler_params=pltpu.CompilerParams(
            dimension_semantics=("parallel",),   # shard batch tiles across v7x TCs
            vmem_limit_bytes=vmem_limit),
    )(feats, cluster_feats, key, w_packed, vec_packed)
    return out
    # TODO(synk): for very large N (>= 128) a lane-dense (BT, 1, N) score
    # layout with an online-softmax accumulator would pay off; at small N the
    # VPU/XLU path above is the right regime.


def init_params(key, feat_size, hidden_size, att_size):
    ks = jax.random.split(key, 10)

    def lin(k, out_dim, in_dim):
        scale = 1.0 / jnp.sqrt(in_dim)
        return jax.random.uniform(k, (out_dim, in_dim), jnp.float32, -scale, scale)

    def bias(k, out_dim, in_dim):
        scale = 1.0 / jnp.sqrt(in_dim)
        return jax.random.uniform(k, (1, out_dim), jnp.float32, -scale, scale)

    return {
        "wh_w":  lin(ks[0], att_size, hidden_size),
        "wh_b":  bias(ks[1], att_size, hidden_size),
        "wv_w":  lin(ks[2], att_size, feat_size),
        "wv_b":  bias(ks[3], att_size, feat_size),
        "wa_w":  lin(ks[4], 1, att_size),
        "wh2_w": lin(ks[5], att_size, hidden_size),
        "wh2_b": bias(ks[6], att_size, hidden_size),
        "wv2_w": lin(ks[7], att_size, feat_size),
        "wv2_b": bias(ks[8], att_size, feat_size),
        "wa2_w": lin(ks[9], 1, att_size),
    }


def _reference(feats, cluster_feats, key, p):
    # pure-JAX reference for sanity checking (mirrors the PyTorch forward)
    v = jnp.einsum("bnf,af->bna", feats, p["wv_w"]) + p["wv_b"][0]
    h = key @ p["wh_w"].T + p["wh_b"][0]
    scores = jnp.einsum("bna,a->bn", jnp.tanh(h[:, None, :] + v), p["wa_w"][0])
    alpha = jax.nn.softmax(scores, axis=1)
    att = jnp.einsum("bn,bnf->bf", alpha, feats)
    v2 = jnp.einsum("bcf,af->bca", cluster_feats, p["wv2_w"]) + p["wv2_b"][0]
    h2 = att @ p["wh2_w"].T + p["wh2_b"][0]
    scores2 = jnp.einsum("bca,a->bc", jnp.tanh(h2[:, None, :] + v2), p["wa2_w"][0])
    alpha2 = jax.nn.softmax(scores2, axis=1)
    att2 = jnp.einsum("bc,bcf->bf", alpha2, cluster_feats)
    return att + att2


if __name__ == "__main__":
    B, N, C = 32, 8, 8
    feat_size = 128
    hidden_size = 128   # must equal feat_size (see note at top)
    att_size = 128

    root = jax.random.PRNGKey(0)
    k_feats, k_clus, k_key, k_params = jax.random.split(root, 4)

    feats = jax.random.normal(k_feats, (B, N, feat_size), jnp.float32)
    cluster_feats = jax.random.normal(k_clus, (B, C, feat_size), jnp.float32)
    key = jax.random.normal(k_key, (B, hidden_size), jnp.float32)
    params = init_params(k_params, feat_size, hidden_size, att_size)

    # block_b=16 -> BT*N = 128 per step and a 2-step grid (both v7x TCs busy).
    out = my_attention(feats, cluster_feats, key, params, block_b=16)
    out = jax.block_until_ready(out)

    ref = _reference(feats, cluster_feats, key, params)
    assert out.shape == (B, feat_size)
    assert jnp.allclose(out, ref, atol=1e-3, rtol=1e-3), \
        float(jnp.max(jnp.abs(out - ref)))

    print("KERNEL_OK")
</pallas_src>

<mosaic_0001>
module attributes {stable_mosaic.version = 11 : i64} {
  func.func @_attention_kernel(%arg0: i32, %arg1: memref<16x8x128xf32, #tpu.memory_space<vmem>>, %arg2: memref<16x8x128xf32, #tpu.memory_space<vmem>>, %arg3: memref<16x128xf32, #tpu.memory_space<vmem>>, %arg4: memref<4x128x128xf32, #tpu.memory_space<vmem>>, %arg5: memref<4x128xf32, #tpu.memory_space<vmem>>, %arg6: memref<16x128xf32, #tpu.memory_space<vmem>>) attributes {dimension_semantics = [#tpu.dimension_semantics<parallel>], iteration_bounds = array<i64: 2>, scalar_prefetch = 0 : i64, scratch_operands = 0 : i64, tpu.core_type = #tpu.core_type<tc>, window_params = [{transform_indices = @transform_0, window_bounds = array<i64: 16, 8, 128>}, {transform_indices = @transform_1, window_bounds = array<i64: 16, 8, 128>}, {transform_indices = @transform_2, window_bounds = array<i64: 16, 128>}, {pipeline_mode = #tpu.pipeline_mode<synchronous>, transform_indices = @transform_3, window_bounds = array<i64: 4, 128, 128>}, {pipeline_mode = #tpu.pipeline_mode<synchronous>, transform_indices = @transform_4, window_bounds = array<i64: 4, 128>}, {transform_indices = @transform_5, window_bounds = array<i64: 16, 128>}]} {
    %c0 = arith.constant 0 : index
    %c0_0 = arith.constant 0 : index
    %c0_1 = arith.constant 0 : index
    %0 = vector.load %arg1[%c0, %c0_0, %c0_1] : memref<16x8x128xf32, #tpu.memory_space<vmem>>, vector<16x8x128xf32>
    %c0_2 = arith.constant 0 : index
    %c0_3 = arith.constant 0 : index
    %c0_4 = arith.constant 0 : index
    %1 = vector.load %arg2[%c0_2, %c0_3, %c0_4] : memref<16x8x128xf32, #tpu.memory_space<vmem>>, vector<16x8x128xf32>
    %c0_5 = arith.constant 0 : index
    %c0_6 = arith.constant 0 : index
    %2 = vector.load %arg3[%c0_5, %c0_6] : memref<16x128xf32, #tpu.memory_space<vmem>>, vector<16x128xf32>
    %c0_7 = arith.constant 0 : index
    %c0_8 = arith.constant 0 : index
    %c0_9 = arith.constant 0 : index
    %3 = vector.load %arg4[%c0_7, %c0_8, %c0_9] : memref<4x128x128xf32, #tpu.memory_space<vmem>>, vector<1x128x128xf32>
    %4 = vector.shape_cast %3 : vector<1x128x128xf32> to vector<128x128xf32>
    %c1 = arith.constant 1 : index
    %c0_10 = arith.constant 0 : index
    %c0_11 = arith.constant 0 : index
    %5 = vector.load %arg4[%c1, %c0_10, %c0_11] : memref<4x128x128xf32, #tpu.memory_space<vmem>>, vector<1x128x128xf32>
    %6 = vector.shape_cast %5 : vector<1x128x128xf32> to vector<128x128xf32>
    %c2 = arith.constant 2 : index
    %c0_12 = arith.constant 0 : index
    %c0_13 = arith.constant 0 : index
    %7 = vector.load %arg4[%c2, %c0_12, %c0_13] : memref<4x128x128xf32, #tpu.memory_space<vmem>>, vector<1x128x128xf32>
    %8 = vector.shape_cast %7 : vector<1x128x128xf32> to vector<128x128xf32>
    %c3 = arith.constant 3 : index
    %c0_14 = arith.constant 0 : index
    %c0_15 = arith.constant 0 : index
    %9 = vector.load %arg4[%c3, %c0_14, %c0_15] : memref<4x128x128xf32, #tpu.memory_space<vmem>>, vector<1x128x128xf32>
    %10 = vector.shape_cast %9 : vector<1x128x128xf32> to vector<128x128xf32>
    %c0_16 = arith.constant 0 : index
    %c0_17 = arith.constant 0 : index
    %11 = vector.load %arg5[%c0_16, %c0_17] : memref<4x128xf32, #tpu.memory_space<vmem>>, vector<1x128xf32>
    %c1_18 = arith.constant 1 : index
    %c0_19 = arith.constant 0 : index
    %12 = vector.load %arg5[%c1_18, %c0_19] : memref<4x128xf32, #tpu.memory_space<vmem>>, vector<1x128xf32>
    %c2_20 = arith.constant 2 : index
    %c0_21 = arith.constant 0 : index
    %13 = vector.load %arg5[%c2_20, %c0_21] : memref<4x128xf32, #tpu.memory_space<vmem>>, vector<1x128xf32>
    %c3_22 = arith.constant 3 : index
    %c0_23 = arith.constant 0 : index
    %14 = vector.load %arg5[%c3_22, %c0_23] : memref<4x128xf32, #tpu.memory_space<vmem>>, vector<1x128xf32>
    %15 = vector.shape_cast %0 : vector<16x8x128xf32> to vector<128x128xf32>
    %cst = arith.constant dense<0.000000e+00> : vector<128x128xf32>
    %16 = tpu.matmul %15, %6, %cst {dimension_numbers = #tpu.dot_dimension_numbers<[1], [0], [0], [1], [0, 0, 1, 1], [], []>} : vector<128x128xf32>, vector<128x128xf32>, vector<128x128xf32> -> vector<128x128xf32>
    %17 = vector.shape_cast %16 : vector<128x128xf32> to vector<16x8x128xf32>
    %cst_24 = arith.constant dense<0.000000e+00> : vector<16x128xf32>
    %18 = tpu.matmul %2, %4, %cst_24 {dimension_numbers = #tpu.dot_dimension_numbers<[1], [0], [0], [1], [0, 0, 1, 1], [], []>} : vector<16x128xf32>, vector<128x128xf32>, vector<16x128xf32> -> vector<16x128xf32>
    %19 = vector.shape_cast %18 : vector<16x128xf32> to vector<16x1x128xf32>
    %20 = vector.broadcast %19 : vector<16x1x128xf32> to vector<16x8x128xf32>
    %21 = arith.addf %17, %20 : vector<16x8x128xf32>
    %22 = vector.shape_cast %11 : vector<1x128xf32> to vector<1x1x128xf32>
    %23 = vector.broadcast %22 : vector<1x1x128xf32> to vector<16x8x128xf32>
    %24 = arith.addf %21, %23 : vector<16x8x128xf32>
    %25 = math.tanh %24 : vector<16x8x128xf32>
    %26 = vector.shape_cast %13 : vector<1x128xf32> to vector<1x1x128xf32>
    %27 = vector.broadcast %26 : vector<1x1x128xf32> to vector<16x8x128xf32>
    %28 = arith.mulf %25, %27 : vector<16x8x128xf32>
    %cst_25 = arith.constant dense<0.000000e+00> : vector<16x8xf32>
    %29 = vector.multi_reduction <add>, %28, %cst_25 [2] : vector<16x8x128xf32> to vector<16x8xf32>
    %cst_26 = arith.constant dense<0xFF800000> : vector<16xf32>
    %30 = vector.multi_reduction <maximumf>, %29, %cst_26 [1] : vector<16x8xf32> to vector<16xf32>
    %31 = vector.shape_cast %30 : vector<16xf32> to vector<16x1xf32>
    %32 = vector.broadcast %31 : vector<16x1xf32> to vector<16x8xf32>
    %33 = arith.subf %29, %32 : vector<16x8xf32>
    %34 = math.exp %33 : vector<16x8xf32>
    %cst_27 = arith.constant dense<0.000000e+00> : vector<16xf32>
    %35 = vector.multi_reduction <add>, %34, %cst_27 [1] : vector<16x8xf32> to vector<16xf32>
    %36 = vector.shape_cast %35 : vector<16xf32> to vector<16x1xf32>
    %37 = vector.broadcast %36 : vector<16x1xf32> to vector<16x8xf32>
    %38 = arith.divf %34, %37 : vector<16x8xf32>
    %39 = vector.shape_cast %38 : vector<16x8xf32> to vector<16x8x1xf32>
    %40 = vector.broadcast %39 : vector<16x8x1xf32> to vector<16x8x128xf32>
    %41 = arith.mulf %40, %0 : vector<16x8x128xf32>
    %cst_28 = arith.constant dense<0.000000e+00> : vector<16x128xf32>
    %42 = vector.multi_reduction <add>, %41, %cst_28 [1] : vector<16x8x128xf32> to vector<16x128xf32>
    %43 = vector.shape_cast %1 : vector<16x8x128xf32> to vector<128x128xf32>
    %cst_29 = arith.constant dense<0.000000e+00> : vector<128x128xf32>
    %44 = tpu.matmul %43, %10, %cst_29 {dimension_numbers = #tpu.dot_dimension_numbers<[1], [0], [0], [1], [0, 0, 1, 1], [], []>} : vector<128x128xf32>, vector<128x128xf32>, vector<128x128xf32> -> vector<128x128xf32>
    %45 = vector.shape_cast %44 : vector<128x128xf32> to vector<16x8x128xf32>
    %cst_30 = arith.constant dense<0.000000e+00> : vector<16x128xf32>
    %46 = tpu.matmul %42, %8, %cst_30 {dimension_numbers = #tpu.dot_dimension_numbers<[1], [0], [0], [1], [0, 0, 1, 1], [], []>} : vector<16x128xf32>, vector<128x128xf32>, vector<16x128xf32> -> vector<16x128xf32>
    %47 = vector.shape_cast %46 : vector<16x128xf32> to vector<16x1x128xf32>
    %48 = vector.broadcast %47 : vector<16x1x128xf32> to vector<16x8x128xf32>
    %49 = arith.addf %45, %48 : vector<16x8x128xf32>
    %50 = vector.shape_cast %12 : vector<1x128xf32> to vector<1x1x128xf32>
    %51 = vector.broadcast %50 : vector<1x1x128xf32> to vector<16x8x128xf32>
    %52 = arith.addf %49, %51 : vector<16x8x128xf32>
    %53 = math.tanh %52 : vector<16x8x128xf32>
    %54 = vector.shape_cast %14 : vector<1x128xf32> to vector<1x1x128xf32>
    %55 = vector.broadcast %54 : vector<1x1x128xf32> to vector<16x8x128xf32>
    %56 = arith.mulf %53, %55 : vector<16x8x128xf32>
    %cst_31 = arith.constant dense<0.000000e+00> : vector<16x8xf32>
    %57 = vector.multi_reduction <add>, %56, %cst_31 [2] : vector<16x8x128xf32> to vector<16x8xf32>
    %cst_32 = arith.constant dense<0xFF800000> : vector<16xf32>
    %58 = vector.multi_reduction <maximumf>, %57, %cst_32 [1] : vector<16x8xf32> to vector<16xf32>
    %59 = vector.shape_cast %58 : vector<16xf32> to vector<16x1xf32>
    %60 = vector.broadcast %59 : vector<16x1xf32> to vector<16x8xf32>
    %61 = arith.subf %57, %60 : vector<16x8xf32>
    %62 = math.exp %61 : vector<16x8xf32>
    %cst_33 = arith.constant dense<0.000000e+00> : vector<16xf32>
    %63 = vector.multi_reduction <add>, %62, %cst_33 [1] : vector<16x8xf32> to vector<16xf32>
    %64 = vector.shape_cast %63 : vector<16xf32> to vector<16x1xf32>
    %65 = vector.broadcast %64 : vector<16x1xf32> to vector<16x8xf32>
    %66 = arith.divf %62, %65 : vector<16x8xf32>
    %67 = vector.shape_cast %66 : vector<16x8xf32> to vector<16x8x1xf32>
    %68 = vector.broadcast %67 : vector<16x8x1xf32> to vector<16x8x128xf32>
    %69 = arith.mulf %68, %1 : vector<16x8x128xf32>
    %cst_34 = arith.constant dense<0.000000e+00> : vector<16x128xf32>
    %70 = vector.multi_reduction <add>, %69, %cst_34 [1] : vector<16x8x128xf32> to vector<16x128xf32>
    %71 = arith.addf %42, %70 : vector<16x128xf32>
    %c0_35 = arith.constant 0 : index
    %c0_36 = arith.constant 0 : index
    %72 = vector.load %arg6[%c0_35, %c0_36] : memref<16x128xf32, #tpu.memory_space<vmem>>, vector<16x128xf32>
    tpu.vector_store %arg6[%c0_35, %c0_36], %71 {strides = array<i32>} : memref<16x128xf32, #tpu.memory_space<vmem>>, vector<16x128xf32>,
    return
  }
  func.func @transform_0(%arg0: i32) -> (i32, i32, i32) {
    %c0_i32 = arith.constant 0 : i32
    %c0_i32_0 = arith.constant 0 : i32
    %c0_i32_1 = arith.constant 0 : i32
    return %arg0, %c0_i32, %c0_i32_0 : i32, i32, i32
  }
  func.func @transform_1(%arg0: i32) -> (i32, i32, i32) {
    %c0_i32 = arith.constant 0 : i32
    %c0_i32_0 = arith.constant 0 : i32
    %c0_i32_1 = arith.constant 0 : i32
    return %arg0, %c0_i32, %c0_i32_0 : i32, i32, i32
  }
  func.func @transform_2(%arg0: i32) -> (i32, i32) {
    %c0_i32 = arith.constant 0 : i32
    %c0_i32_0 = arith.constant 0 : i32
    return %arg0, %c0_i32 : i32, i32
  }
  func.func @transform_3(%arg0: i32) -> (i32, i32, i32) {
    %c0_i32 = arith.constant 0 : i32
    %c0_i32_0 = arith.constant 0 : i32
    %c0_i32_1 = arith.constant 0 : i32
    %c0_i32_2 = arith.constant 0 : i32
    return %c0_i32, %c0_i32_0, %c0_i32_1 : i32, i32, i32
  }
  func.func @transform_4(%arg0: i32) -> (i32, i32) {
    %c0_i32 = arith.constant 0 : i32
    %c0_i32_0 = arith.constant 0 : i32
    %c0_i32_1 = arith.constant 0 : i32
    return %c0_i32, %c0_i32_0 : i32, i32
  }
  func.func @transform_5(%arg0: i32) -> (i32, i32) {
    %c0_i32 = arith.constant 0 : i32
    %c0_i32_0 = arith.constant 0 : i32
    return %arg0, %c0_i32 : i32, i32
  }
}

</mosaic_0001>

<bundles_post_ra>
// kernel: tpu_custom_call.1
= control target key start
LH: loop header
LB: loop body
LE: loop exit
PB: predicated region body
PF: predicated region fallthrough
CT: control target
= control target key end

     0   :  { %s4972_s0 = inlined_call_operand.hbm [shape: f32[32,8,128], index: 0, kind: input, shape index: {}]   ;;  %s4973_s1 = inlined_call_operand.hbm [shape: f32[32,8,128], index: 1, kind: input, shape index: {}]   ;;  %s4974_s2 = inlined_call_operand.hbm [shape: f32[32,128], index: 2, kind: input, shape index: {}]   ;;  %s4975_s3 = inlined_call_operand.hbm [shape: f32[4,128,128], index: 3, kind: input, shape index: {}]   ;;  %s4976_s4 = inlined_call_operand.vmem [shape: f32[4,128], index: 4, kind: input, shape index: {}]   ;;  %s4977_s5 = inlined_call_operand.hbm [shape: f32[32,128], index: 5, kind: output, shape index: {}]  }
   0x1   :  { %4989 = sst [smem:[#allocation17_spill]] %s4973_s1 }
   0x2   :  { %10 = vsyncpa [#allocation3], 0 }
   0x3   :  { %12 = vsyncpa [#allocation3 + $0x1], 0 }
   0x4   :  { %13 = vsyncpa [#allocation6], 0 }
   0x5   :  { %15 = vsyncpa [#allocation6 + $0x1], 0 }
   0x6   :  { %16 = vsyncpa [#allocation9], 0 }
   0x7   :  { %17 = vsyncpa [#allocation4], 0 }
   0x8   :  { %19 = vsyncpa [#allocation4 + $0x1], 0  ;;  %s3898_s18 = smov 0   ;;  %s3900_s19 = smov 0  }
   0x9   :  { %s3902_s20 = smov 0   ;;  %s3904_s21 = smov 0  }
   0xa LB: > { %4990 = sst [smem:[#allocation15_spill]] %s3851_s20  ;;  %s3919_s22 = sadd.s32 1, %s3855_s21   ;;  %s3855_s21 = sphi %s3904_s21, %s5016_s21   ;;  %s3851_s20 = sphi %s3902_s20, %s5013_s20   ;;  %s3847_s19 = sphi %s3900_s19, %s5015_s19   ;;  %s3843_s18 = sphi %s3898_s18, %s5014_s18  }
   0xb   : > { %s32_s23 = sadd.s32 1, %s3851_s20  ;;  %s29_s24 = ssub.s32 %s3855_s21, %s3919_s22 }
   0xc   : > { %p4978_p0 = scmp.ne.s32.totalorder %s3851_s20, %s3847_s19  ;;  %p30_p1 = scmp.eq.s32.totalorder %s29_s24, 0 }
   0xd   : > { %p40_p2 = scmp.eq.s32.totalorder %s3855_s21, 0  ;;  %p3405_p5 = scmp.lt.s32.totalorder %s3855_s21, 2 }
   0xe   : > { %s3928_s25 = scalar_select %p30_p1, %s3851_s20, %s32_s23  }
   0xf   : > { %p41_p3 = por %p40_p2, %p4978_p0  ;;  %s3936_s26 = sand.u32 1, %s3851_s20  }
  0x10   : > { %4991 = sst [smem:[#allocation16_spill]] %s3928_s25  ;;  %s3064_s27 = sshll.u32 %s3936_s26, 7 }
  0x11   : > { %s3088_s28 = sshll.u32 %s3855_s21, 11  ;;  %p3940_p6 = pnand %p3405_p5, %p41_p3 }
  0x12   : > { %s226_s30 = sand.u32 1, %s3855_s21   ;;  %s4993_s1 = sld [smem:[#allocation17_spill]] }
  0x13   : > { %s230_s9 = scalar_lea.vmem [#allocation5], %s3064_s27  ;;  %s3956_s11 = scalar_lea.sflag [#allocation6], %s226_s30 }
  0x14   : > { %s237_s10 = sshll.u32 %s230_s9, 4  ;;  %p3962_p8 = pneg %p3940_p6  ;;  %s3954_s10 = int_to_ptr.vmem [resolvable:$true] %s237_s10 }
  0x18   : > { %s3950_s8 = scalar_lea.hbm %s4993_s1, %s3088_s28  ;;  %s3678_s16 = scalar_lea.hbm %s4993_s1, 4096 }
  0x19   : > { %s3673_s12 = scalar_lea.hbm %s3950_s8, 2048  ;;  %p3679_p11 = scmp.lt.s32.totalorder %s3950_s8, %s4993_s1 }
  0x1a   : > { %p3674_p7 = scmp.ne.s32.totalorder %s3950_s8, %s3673_s12  ;;  %p3680_p12 = scmp.lt.s32.totalorder %s3678_s16, %s3673_s12 }
  0x1c   : > { %p3676_p9 = pnand %p3962_p8, %p3674_p7  ;;  %p3681_p13 = por %p3680_p12, %p3679_p11 }
  0x1e   : > { %p3677_p10 = pneg %p3676_p9 }
  0x20   : > { %p3682_p1 = pnand %p3681_p13, %p3677_p10 }
  0x22   : > { %3685 = shalt.err (!%p3682_p1)
}
  0x23   : > { %s3686_s24 = scalar_lea.vmem %s3954_s10, 2048  ;;  %s3857_s30 = smov [#allocation5]  }
  0x24   : > { %p3687_p2 = scmp.ne.s32.totalorder %s3954_s10, %s3686_s24  ;;  %s3691_s6 = sshll.u32 %s3857_s30, 4  ;;  %s3692_s6 = int_to_ptr.vmem [resolvable:$false] %s3691_s6 }
  0x25   : > { %s3693_s7 = scalar_lea.vmem %s3692_s6, 4096  ;;  %p3694_p7 = scmp.lt.s32.totalorder %s3954_s10, %s3692_s6 }
  0x26   : > { %p3689_p3 = pnand %p3687_p2, %p3962_p8  ;;  %p3695_p9 = scmp.lt.s32.totalorder %s3693_s7, %s3686_s24 }
  0x28   : > { %p3690_p5 = pneg %p3689_p3  ;;  %p3696_p4 = por %p3695_p9, %p3694_p7 }
  0x2a   : > { %p3697_p0 = pnand %p3696_p4, %p3690_p5 }
  0x2c   : > { %3700 = shalt.err (!%p3697_p0)
}
  0x2d   : > { %s4979_s9 = smov 128   ;;  %s4981_s12 = smov 8  }
  0x2e   : > { %3396 = dma.hbm_to_vmem [thread:$0]  (!%p3940_p6), %s3950_s8, 2048, %s3954_s10, %s3956_s11, %s4979_s9, %s4979_s9, %s4981_s12  }
  0x2f   : > { %s3989_s14 = sadd.s32 4294967295, %s3855_s21   ;;  %s3060_s15 = sadd.s32 4294967294, %s3855_s21  }
  0x30   : > { %p45_p0 = scmp.ne.s32.totalorder %s3847_s19, %s3843_s18  ;;  %p4983_p4 = scmp.eq.s32.totalorder %s3989_s14, 0 }
  0x31   : > { %p163_p10 = scmp.eq.s32.totalorder %s3989_s14, 1  ;;  %p169_p11 = scmp.eq.s32.totalorder %s3060_s15, 1 }
  0x32   : > { %p3998_p12 = por %p4983_p4, %p45_p0  ;;  %p3061_p13 = scmp.ge.s32.totalorder %s3855_s21, 1 }
  0x33   : > { %p4996_p1 = scmp.ne.s32.totalorder %s3851_s20, %s3847_s19  ;;  %p4010_p3 = por %p169_p11, %p45_p0 }
  0x34   : > { %s4995_s16 = scalar_select %p3998_p12, 1, 0 }
  0x35   : > { %p4006_p2 = por %p163_p10, %p4996_p1  ;;  %p176_p5 = scmp.lt.s32.totalorder %s3855_s21, 3 }
  0x36   : > { %s4998_s10 = scalar_select %p4010_p3, 1, 0 }
  0x37   : > { %s4997_s8 = scalar_select %p4006_p2, 1, 0 }
  0x38   : > { %p4015_p7 = pnand %p3061_p13, %p176_p5  ;;  %s3860_s23 = smov [#allocation8]  }
  0x39   : > { %s188_s24 = sshll.u32 %s3860_s23, 4  ;;  %s4028_s7 = scalar_lea.hbm %s4972_s0, %s3088_s28  ;;  %s4019_s24 = int_to_ptr.vmem [resolvable:$true] %s188_s24 }
  0x3a   : > { %s4999_s17 = scalar_select %p4015_p7, 1, 0 }
  0x3b   : > { %p3386_p9 = pneg %p4015_p7  ;;  %s209_s15 = scalar_lea.vmem [#allocation2], %s3064_s27 }
  0x3c   : > { %s216_s9 = sshll.u32 %s209_s15, 4  ;;  %s206_s1 = scalar_lea.sflag [#allocation3], %s3936_s26  ;;  %s4039_s9 = int_to_ptr.vmem [resolvable:$true] %s216_s9 }
  0x3d   : > { %p4035_p0 = pnand %p3386_p9, %p4983_p4  ;;  %s3701_s25 = scalar_lea.hbm %s4028_s7, 2048 }
  0x3e   : > { %p3702_p10 = scmp.ne.s32.totalorder %s4028_s7, %s3701_s25  ;;  %s3706_s6 = scalar_lea.hbm %s4972_s0, 4096 }
  0x3f   : > { %s5000_s23 = scalar_select %p4035_p0, 1, 0 }
  0x40   : > { %p3704_p11 = pnand %p3702_p10, %p3962_p8  ;;  %p3707_p1 = scmp.lt.s32.totalorder %s4028_s7, %s4972_s0 }
  0x41   : > { %p3708_p5 = scmp.lt.s32.totalorder %s3706_s6, %s3701_s25 }
  0x42   : > { %p3705_p13 = pneg %p3704_p11 }
  0x43   : > { %p3709_p9 = por %p3708_p5, %p3707_p1 }
  0x45   : > { %p3710_p4 = pnand %p3709_p9, %p3705_p13 }
  0x47   : > { %3713 = shalt.err (!%p3710_p4)
}
  0x48   : > { %s3714_s12 = scalar_lea.vmem %s4039_s9, 2048  ;;  %s3861_s20 = smov [#allocation2]  }
  0x49   : > { %p3715_p3 = scmp.ne.s32.totalorder %s4039_s9, %s3714_s12  ;;  %s3719_s28 = sshll.u32 %s3861_s20, 4  ;;  %s3720_s28 = int_to_ptr.vmem [resolvable:$false] %s3719_s28 }
  0x4a   : > { %s3721_s30 = scalar_lea.vmem %s3720_s28, 4096  ;;  %p3722_p2 = scmp.lt.s32.totalorder %s4039_s9, %s3720_s28 }
  0x4b   : > { %p3717_p10 = pnand %p3715_p3, %p3962_p8  ;;  %p3723_p12 = scmp.lt.s32.totalorder %s3721_s30, %s3714_s12 }
  0x4d   : > { %p3718_p11 = pneg %p3717_p10  ;;  %p3724_p7 = por %p3723_p12, %p3722_p2 }
  0x4f   : > { %p3725_p0 = pnand %p3724_p7, %p3718_p11 }
  0x51   : > { %3728 = shalt.err (!%p3725_p0)
}
  0x52   : > { %s5001_s25 = smov 8   ;;  %s5002_s6 = smov 128  }
  0x53   : > { %3393 = dma.hbm_to_vmem [thread:$0]  (!%p3940_p6), %s4028_s7, 2048, %s4039_s9, %s206_s1, %s5002_s6, %s5002_s6, %s5001_s25  }
  0x54   : > { %p5003_p4 = scmp.ne.s32.totalorder %s5000_s23, 0  ;;  %s3740_s20 = scalar_lea.vmem %s4019_s24, 8192 }
  0x55   : > { %p3741_p13 = scmp.ne.s32.totalorder %s4019_s24, %s3740_s20  ;;  %p3748_p2 = scmp.lt.s32.totalorder %s4019_s24, %s4019_s24 }
  0x56   : > { %p3731_p3 = pneg %p5003_p4  ;;  %p3749_p7 = scmp.lt.s32.totalorder %s3740_s20, %s3740_s20 }
  0x58   : > { %p3743_p1 = pnand %p3741_p13, %p3731_p3  ;;  %p3750_p0 = por %p3749_p7, %p3748_p2 }
  0x5a   : > { %p3744_p12 = pneg %p3743_p1 }
  0x5c   : > { %p3751_p5 = pnand %p3750_p0, %p3744_p12 }
  0x5e   : > { %3754 = shalt.err (!%p3751_p5)
}
  0x5f   : > { %3389 = dma.hbm_to_vmem [thread:$0]  (!%p5003_p4), %s4975_s3, 8192, %s4019_s24, [#allocation9], %s5002_s6, %s5002_s6, %s5001_s25  }
  0x60   : > { %s3090_s9 = sshll.u32 %s3855_s21, 8  ;;  %s5004_s7 = sshll.u32 %s3936_s26, 4 }
  0x61   : > { %s251_s27 = scalar_lea.vmem [#allocation7], %s5004_s7  ;;  %s4086_s20 = scalar_lea.hbm %s4974_s2, %s3090_s9 }
  0x62   : > { %s258_s15 = sshll.u32 %s251_s27, 4  ;;  %s3755_s23 = scalar_lea.hbm %s4086_s20, 256  ;;  %s259_s15 = int_to_ptr.vmem [resolvable:$true] %s258_s15 }
  0x63   : > { %p3756_p9 = scmp.ne.s32.totalorder %s4086_s20, %s3755_s23  ;;  %s3760_s26 = scalar_lea.hbm %s4974_s2, 512 }
  0x64   : > { %p3761_p4 = scmp.lt.s32.totalorder %s4086_s20, %s4974_s2  ;;  %p3762_p3 = scmp.lt.s32.totalorder %s3760_s26, %s3755_s23 }
  0x65   : > { %p3758_p10 = pnand %p3756_p9, %p3962_p8 }
  0x66   : > { %p3763_p13 = por %p3762_p3, %p3761_p4 }
  0x67   : > { %p3759_p11 = pneg %p3758_p10 }
  0x69   : > { %p3764_p1 = pnand %p3763_p13, %p3759_p11 }
  0x6b   : > { %3767 = shalt.err (!%p3764_p1)
}
  0x6c   : > { %s3768_s9 = scalar_lea.vmem %s259_s15, 256  ;;  %s3862_s27 = smov [#allocation7]  }
  0x6d   : > { %p3769_p12 = scmp.ne.s32.totalorder %s259_s15, %s3768_s9  ;;  %s3773_s28 = sshll.u32 %s3862_s27, 4  ;;  %s3774_s28 = int_to_ptr.vmem [resolvable:$false] %s3773_s28 }
  0x6e   : > { %s3775_s30 = scalar_lea.vmem %s3774_s28, 512  ;;  %p3776_p0 = scmp.lt.s32.totalorder %s259_s15, %s3774_s28 }
  0x6f   : > { %p3771_p2 = pnand %p3769_p12, %p3962_p8  ;;  %p3777_p5 = scmp.lt.s32.totalorder %s3775_s30, %s3768_s9 }
  0x71   : > { %p3772_p7 = pneg %p3771_p2  ;;  %p3778_p9 = por %p3777_p5, %p3776_p0 }
  0x73   : > { %p3779_p10 = pnand %p3778_p9, %p3772_p7 }
  0x75   : > { %3782 = shalt.err (!%p3779_p10)
}
  0x76   : > { %3399 = dma.hbm_to_vmem [thread:$0]  (!%p3940_p6), %s4086_s20, 256, %s259_s15, %s3956_s11, %s5002_s6, %s5002_s6, %s5001_s25  }
  0x77   : > { %p5005_p8 = scmp.ne.s32.totalorder %s4999_s17, 0 }
  0x78   : > { %s4111_s13 = sand.u32 (!%p5005_p8), 1, %s3847_s19   ;;  %p5006_p11 = scmp.ne.s32.totalorder (!%p5005_p8), %s4995_s16, 0 }
  0x79   : > { %270 = sbr.rel (%p5005_p8) target bundleno = 2249 (0x8c9), region = 40  ;;  %s3074_s23 = sshll.u32 (!%p5005_p8), %s4111_s13, 7 }
  0x7a   : > { %s273_s12 = scalar_lea.sflag (!%p5005_p8), [#allocation3], %s4111_s13  ;;  %s4115_s24 = scalar_lea.vmem (!%p5005_p8), [#allocation2], %s3074_s23 }
  0x7e   : > { %3826 = dma.done.wait (%p5006_p11), %s273_s12, 2048  }
  0x7f   : > { %3828 = vsyncadd (%p5006_p11), %s273_s12, 4294965248  ;;  %s281_s29 = sand.u32 1, %s3989_s14   ;;  %s4122_s17 = scalar_lea.vmem [#allocation5], %s3074_s23 }
  0x80   : > { %s282_s11 = scalar_lea.sflag [#allocation6], %s281_s29 }
  0x81   : > { %3830 = dma.done.wait (%p5006_p11), %s282_s11, 2304  }
  0x82   : > { %3832 = vsyncadd (%p5006_p11), %s282_s11, 4294964992  ;;  %s3076_s25 = sshll.u32 %s4111_s13, 4  ;;  %p5007_p6 = scmp.eq.s32.totalorder %s3989_s14, 0 }
  0x83   : > { %s4131_s6 = scalar_lea.vmem [#allocation7], %s3076_s25 }
  0x84   : > { %3834 = dma.done.wait (%p5007_p6), [#allocation9], 8192   ;;  %p5008_p4 = pmov %p5007_p6 }
  0x85   : > { %v405_v0 = vld [vmem:[#allocation8 + $0xf8] sm:$0xff]  ;;  %v404_v2 = vld [vmem:[#allocation8 + $0xf0] sm:$0xff]  ;;  %v403_v4 = vld [vmem:[#allocation8 + $0xe8] sm:$0xff]  ;;  %v3863_v50 = vmov 1966171168   ;;  %v670_v52 = vlaneseq  ;;  %vm1030_vm0 = vcmask 1041409  }
  0x86   : > { %3836 = vsyncadd (%p5008_p4), [#allocation9], 4294959104  ;;  %v388_v1 = vld [vmem:[#allocation8 + $0x78] sm:$0xff]  ;;  %3192 = vmatprep.subr.mxu0 %v405_v0  ;;  %v387_v3 = vld [vmem:[#allocation8 + $0x70] sm:$0xff]  ;;  %v668_v51 = vunpack.c.l.s4 %v3863_v50  ;;  %vm1032_vm1 = vcmask 1042434   ;;  %vm1034_vm2 = vcmask 1043459  }
  0x87   : > { %3248 = vmatprep.subr.mxu1 %v388_v1  ;;  %3193 = vmatpush3.msra.mxu0 %v405_v0  ;;  %v386_v5 = vld [vmem:[#allocation8 + $0x68] sm:$0xff]  ;;  %v402_v6 = vld [vmem:[#allocation8 + $0xe0] sm:$0xff]  ;;  %v401_v8 = vld [vmem:[#allocation8 + $0xd8] sm:$0xff]  ;;  %v4156_v54 = vshrl.u32 %v670_v52, 7  ;;  %vm1036_vm3 = vcmask 1044484   ;;  %vm1038_vm4 = vcmask 1045509  }
  0x88   : > { %3249 = vmatpush3.msra.mxu1 %v388_v1  ;;  %3194 = vmatprep.subr.mxu0 %v404_v2  ;;  %v385_v7 = vld [vmem:[#allocation8 + $0x60] sm:$0xff]  ;;  %v384_v9 = vld [vmem:[#allocation8 + $0x58] sm:$0xff]  ;;  %v400_v10 = vld [vmem:[#allocation8 + $0xd0] sm:$0xff]  ;;  %v669_v53 = vunpack.c.0.s8 %v668_v51  ;;  %vm1040_vm5 = vcmask 1046534   ;;  %vm1042_vm6 = vcmask 1047559   ;;  %vm1053_vm7 = vcmask 64512  }
  0x89   : > { %3250 = vmatprep.subr.mxu1 %v387_v3  ;;  %3195 = vmatpush3.msra.mxu0 %v404_v2  ;;  %v383_v11 = vld [vmem:[#allocation8 + $0x50] sm:$0xff]  ;;  %v399_v12 = vld [vmem:[#allocation8 + $0xc8] sm:$0xff]  ;;  %v398_v14 = vld [vmem:[#allocation8 + $0xc0] sm:$0xff]  ;;  %s3091_s28 = sshll.u32 %s3989_s14, 8  ;;  %s334_s30 = scalar_lea.vmem [#allocation10], %s3076_s25 }
  0x8a   : > { %3251 = vmatpush3.msra.mxu1 %v387_v3  ;;  %3196 = vmatprep.subr.mxu0 %v403_v4  ;;  %v382_v13 = vld [vmem:[#allocation8 + $0x48] sm:$0xff]  ;;  %v381_v15 = vld [vmem:[#allocation8 + $0x40] sm:$0xff]  ;;  %v397_v16 = vld [vmem:[#allocation8 + $0xb8] sm:$0xff]  ;;  %v4159_v55 = vsub.s32 %v669_v53, %v4156_v54  ;;  %s2934_s23 = sshll.u32 %s334_s30, 4  ;;  %s2921_s29 = scalar_lea.sflag [#allocation4], %s4111_s13  ;;  %s4926_s23 = int_to_ptr.vmem [resolvable:$true] %s2934_s23 }
  0x8b   : > { %3252 = vmatprep.subr.mxu1 %v386_v5  ;;  %3197 = vmatpush3.msra.mxu0 %v403_v4  ;;  %v380_v17 = vld [vmem:[#allocation8 + $0x38] sm:$0xff]  ;;  %v396_v18 = vld [vmem:[#allocation8 + $0xb0] sm:$0xff]  ;;  %v395_v20 = vld [vmem:[#allocation8 + $0xa8] sm:$0xff]  ;;  %v4166_v4 = vsub.s32 0, %v4156_v54  ;;  %s3783_s11 = scalar_lea.vmem %s4926_s23, 256  ;;  %p5009_p13 = scmp.ne.s32.totalorder %s4997_s8, 0 }
  0x8c   : > { %3253 = vmatpush3.msra.mxu1 %v386_v5  ;;  %3198 = vmatprep.subr.mxu0 %v402_v6  ;;  %v379_v19 = vld [vmem:[#allocation8 + $0x30] sm:$0xff]  ;;  %v378_v21 = vld [vmem:[#allocation8 + $0x28] sm:$0xff]  ;;  %v394_v22 = vld [vmem:[#allocation8 + $0xa0] sm:$0xff]  ;;  %p3784_p3 = scmp.ne.s32.totalorder %s4926_s23, %s3783_s11 }
  0x8d   : > { %3254 = vmatprep.subr.mxu1 %v385_v7  ;;  %3199 = vmatpush3.msra.mxu0 %v402_v6  ;;  %v377_v23 = vld [vmem:[#allocation8 + $0x20] sm:$0xff]  ;;  %v393_v24 = vld [vmem:[#allocation8 + $0x98] sm:$0xff]  ;;  %v392_v26 = vld [vmem:[#allocation8 + $0x90] sm:$0xff] }
  0x8e   : > { %3255 = vmatpush3.msra.mxu1 %v385_v7  ;;  %3200 = vmatprep.subr.mxu0 %v401_v8  ;;  %v376_v25 = vld [vmem:[#allocation8 + $0x18] sm:$0xff]  ;;  %v375_v27 = vld [vmem:[#allocation8 + $0x10] sm:$0xff]  ;;  %v391_v28 = vld [vmem:[#allocation8 + $0x88] sm:$0xff]  ;;  %p3785_p1 = pnand %p3784_p3, %p5009_p13 }
  0x8f   : > { %3256 = vmatprep.subr.mxu1 %v384_v9  ;;  %3201 = vmatpush3.msra.mxu0 %v401_v8  ;;  %v374_v29 = vld [vmem:[#allocation8 + $0x8] sm:$0xff]  ;;  %v390_v30 = vld [vmem:[#allocation8 + $0x80] sm:$0xff]  ;;  %v341_v36 = vld [vmem:[%s4115_s24 + $0x10] sm:$0xff] }
  0x90   : > { %3257 = vmatpush3.msra.mxu1 %v384_v9  ;;  %3202 = vmatprep.subr.mxu0 %v400_v10  ;;  %v373_v31 = vld [vmem:[#allocation8] sm:$0xff]  ;;  %v340_v34 = vld [vmem:[%s4115_s24 + $0x8] sm:$0xff]  ;;  %v342_v37 = vld [vmem:[%s4115_s24 + $0x18] sm:$0xff]  ;;  %p3786_p12 = pneg %p3785_p1 }
  0x91   : > { %3258 = vmatprep.subr.mxu1 %v383_v11  ;;  %3203 = vmatpush3.msra.mxu0 %v400_v10  ;;  %v339_v32 = vld [vmem:[%s4115_s24] sm:$0xff]  ;;  %v372_v35 = vld [vmem:[%s4131_s6 + $0x8] sm:$0xff]  ;;  %v345_v40 = vld [vmem:[%s4115_s24 + $0x30] sm:$0xff] }
  0x92   : > { %3259 = vmatpush3.msra.mxu1 %v383_v11  ;;  %3204 = vmatprep.subr.mxu0 %v399_v12  ;;  %v371_v33 = vld [vmem:[%s4131_s6] sm:$0xff]  ;;  %v344_v39 = vld [vmem:[%s4115_s24 + $0x28] sm:$0xff]  ;;  %v346_v41 = vld [vmem:[%s4115_s24 + $0x38] sm:$0xff] }
  0x93   : > { %3260 = vmatprep.subr.mxu1 %v382_v13  ;;  %3205 = vmatpush3.msra.mxu0 %v399_v12  ;;  %v343_v38 = vld [vmem:[%s4115_s24 + $0x20] sm:$0xff]  ;;  %v348_v43 = vld [vmem:[%s4115_s24 + $0x48] sm:$0xff]  ;;  %v349_v44 = vld [vmem:[%s4115_s24 + $0x50] sm:$0xff] }
  0x94   : > { %3261 = vmatpush3.msra.mxu1 %v382_v13  ;;  %3206 = vmatprep.subr.mxu0 %v398_v14  ;;  %v347_v42 = vld [vmem:[%s4115_s24 + $0x40] sm:$0xff]  ;;  %v350_v45 = vld [vmem:[%s4115_s24 + $0x58] sm:$0xff]  ;;  %v352_v47 = vld [vmem:[%s4115_s24 + $0x68] sm:$0xff] }
  0x95   : > { %3262 = vmatprep.subr.mxu1 %v381_v15  ;;  %3207 = vmatpush3.msra.mxu0 %v398_v14  ;;  %v351_v46 = vld [vmem:[%s4115_s24 + $0x60] sm:$0xff]  ;;  %v353_v48 = vld [vmem:[%s4115_s24 + $0x70] sm:$0xff]  ;;  %v354_v49 = vld [vmem:[%s4115_s24 + $0x78] sm:$0xff] }
  0x96   : > { %3263 = vmatpush3.msra.mxu1 %v381_v15  ;;  %3208 = vmatprep.subr.mxu0 %v397_v16  ;;  %v4174_v13 = vld [vmem:[%s4976_s4] ss:$0 sm:$0xff] }
  0x97   : > { %3264 = vmatprep.subr.mxu1 %v380_v17  ;;  %3209 = vmatpush3.msra.mxu0 %v397_v16 }
  0x98   : > { %3265 = vmatpush3.msra.mxu1 %v380_v17  ;;  %3210 = vmatprep.subr.mxu0 %v396_v18 }
  0x99   : > { %3266 = vmatprep.subr.mxu1 %v379_v19  ;;  %3211 = vmatpush3.msra.mxu0 %v396_v18 }
  0x9a   : > { %3267 = vmatpush3.msra.mxu1 %v379_v19  ;;  %3212 = vmatprep.subr.mxu0 %v395_v20 }
  0x9b   : > { %3268 = vmatprep.subr.mxu1 %v378_v21  ;;  %3213 = vmatpush3.msra.mxu0 %v395_v20 }
  0x9c   : > { %3269 = vmatpush3.msra.mxu1 %v378_v21  ;;  %3214 = vmatprep.subr.mxu0 %v394_v22 }
  0x9d   : > { %3270 = vmatprep.subr.mxu1 %v377_v23  ;;  %3215 = vmatpush3.msra.mxu0 %v394_v22 }
  0x9e   : > { %3271 = vmatpush3.msra.mxu1 %v377_v23  ;;  %3216 = vmatprep.subr.mxu0 %v393_v24 }
  0x9f   : > { %3272 = vmatprep.subr.mxu1 %v376_v25  ;;  %3217 = vmatpush3.msra.mxu0 %v393_v24 }
  0xa0   : > { %3273 = vmatpush3.msra.mxu1 %v376_v25  ;;  %3218 = vmatprep.subr.mxu0 %v392_v26 }
  0xa1   : > { %3274 = vmatprep.subr.mxu1 %v375_v27  ;;  %3219 = vmatpush3.msra.mxu0 %v392_v26 }
  0xa2   : > { %3275 = vmatpush3.msra.mxu1 %v375_v27  ;;  %3220 = vmatprep.subr.mxu0 %v391_v28 }
  0xa3   : > { %3276 = vmatprep.subr.mxu1 %v374_v29  ;;  %3221 = vmatpush3.msra.mxu0 %v391_v28 }
  0xa4   : > { %3277 = vmatpush3.msra.mxu1 %v374_v29  ;;  %3222 = vmatprep.subr.mxu0 %v390_v30 }
  0xa5   : > { %3278 = vmatprep.subr.mxu1 %v373_v31  ;;  %3223 = vmatpush3.msra.mxu0 %v390_v30 }
  0xa6   : > { %3224 = vmatprep.mubr.f32.mxu0 %v339_v32  ;;  %3279 = vmatpush3.msra.mxu1 %v373_v31 }
  0xa7   : > { %3280 = vmatprep.mubr.f32.mxu1 %v371_v33  ;;  %3225 = vmatmul.mubr.f32.vlgmr.msra.gmra.mxu0 %v340_v34 }
  0xa8   : > { %3281 = vmatmul.mubr.f32.vlgmr.msra.gmra.mxu1 %v372_v35  ;;  %3227 = vmatprep.mubr.f32.mxu0 %v341_v36 }
  0xab   : > { %3228 = vmatmul.mubr.f32.gmra.mxu0 %v342_v37 }
  0xac   : > { %3230 = vmatprep.mubr.f32.mxu0 %v343_v38 }
  0xaf   : > { %3231 = vmatmul.mubr.f32.gmra.mxu0 %v344_v39 }
  0xb0   : > { %3233 = vmatprep.mubr.f32.mxu0 %v345_v40 }
  0xb3   : > { %3234 = vmatmul.mubr.f32.gmra.mxu0 %v346_v41 }
  0xb4   : > { %3236 = vmatprep.mubr.f32.mxu0 %v347_v42 }
  0xb7   : > { %3237 = vmatmul.mubr.f32.gmra.mxu0 %v348_v43 }
  0xb8   : > { %3239 = vmatprep.mubr.f32.mxu0 %v349_v44 }
  0xbb   : > { %3240 = vmatmul.mubr.f32.gmra.mxu0 %v350_v45 }
  0xbc   : > { %3242 = vmatprep.mubr.f32.mxu0 %v351_v46 }
  0xbf   : > { %3243 = vmatmul.mubr.f32.gmra.mxu0 %v352_v47 }
  0xc0   : > { %3245 = vmatprep.mubr.f32.mxu0 %v353_v48 }
  0xc3   : > { %3246 = vmatmul.mubr.f32.gmra.mxu0 %v354_v49 }
 0x167   : > { %v3226_v56 = vpop.f32.mrf.mxu0 }
 0x168   : > { %v3282_v57 = vpop.f32.mrf.mxu1 }
 0x169   : > { %v722_v58 = vrot.slane %v3282_v57, %v4159_v55  ;;  %v510_v59 = vpop.f32.mrf.mxu0  ;;  %v715_v6 = vcombine.high %v3282_v57, %v3282_v57 }
 0x16a   : > { %v655_v60 = vpop.f32.mrf.mxu1 }
 0x16b   : > { %v666_v61 = vcombine.high %v655_v60, %v655_v60  ;;  %v673_v62 = vrot.slane %v655_v60, %v4159_v55  ;;  %v3229_v63 = vpop.f32.mrf.mxu0  ;;  %v730_v0 = vcombine.high %v722_v58, %v722_v58  ;;  %v729_v22 = vrot.slane %v715_v6, %v4159_v55 }
 0x16c   : > { %v738_v29 = vrot.slane %v722_v58, %v4159_v55 }
 0x16d   : > { %v680_v1 = vrot.slane %v666_v61, %v4159_v55  ;;  %v681_v2 = vcombine.high %v673_v62, %v673_v62  ;;  %v689_v3 = vrot.slane %v673_v62, %v4159_v55  ;;  %v520_v5 = vpop.f32.mrf.mxu0  ;;  %v752_v16 = vrot.slane %v730_v0, %v4159_v55 }
 0x16e   : > { %v731_v35 = vcombine.high %v729_v22, %v729_v22  ;;  %v760_v42 = vcombine.high %v738_v29, %v738_v29 }
 0x16f   : > { %v682_v7 = vcombine.high %v680_v1, %v680_v1  ;;  %v696_v8 = vrot.slane %v680_v1, %v4159_v55  ;;  %v703_v9 = vrot.slane %v681_v2, %v4159_v55  ;;  %v767_v10 = vrot.slane %v689_v3, %v4166_v4  ;;  %v3232_v12 = vpop.f32.mrf.mxu0 }
 0x170   : > { %v711_v11 = vcombine.high %v689_v3, %v689_v3  ;;  %v762_v30 = vcombine.high %v752_v16, %v752_v16  ;;  %v803_v38 = vrot.slane %v752_v16, %v4166_v4  ;;  %v759_v48 = vrot.slane %v731_v35, %v4159_v55 }
 0x171   : > { %v4177_v14 = vrot.slane %v682_v7, %v4159_v55  ;;  %v783_v15 = vrot.slane %v696_v8, %v4166_v4  ;;  %v771_v17 = vrot.slane %v703_v9, %v4166_v4  ;;  %v844_v18 = vadd.f32 %v767_v10, %v510_v59  ;;  %v530_v21 = vpop.f32.mrf.mxu0 }
 0x172   : > { %v713_v19 = vcombine.high %v703_v9, %v703_v9  ;;  %v775_v20 = vrot.slane %v711_v11, %v4166_v4  ;;  %v712_v39 = vcombine.high %v696_v8, %v696_v8  ;;  %v811_v45 = vrot.slane %v762_v30, %v4166_v4 }
 0x173   : > { %v848_v23 = vadd.f32 %v783_v15, %v530_v21  ;;  %v845_v24 = vadd.f32 %v3226_v56, %v771_v17  ;;  %v864_v25 = vadd.f32 %v4174_v13, %v844_v18  ;;  %v4186_v28 = vpop.f32.mrf.mxu0  ;;  %v787_v33 = vrot.slane %v4177_v14, %v4166_v4 }
 0x174   : > { %v779_v26 = vrot.slane %v713_v19, %v4166_v4  ;;  %v846_v27 = vadd.f32 %v775_v20, %v520_v5  ;;  %v791_v49 = vrot.slane %v712_v39, %v4166_v4  ;;  %v807_v53 = vrot.slane %v760_v42, %v4166_v4  ;;  %v4212_v5 = vld [vmem:[%s4976_s4 + $0x2] ss:$0 sm:$0xff] }
 0x175   : > { %v865_v31 = vadd.f32 %v4174_v13, %v845_v24  ;;  %3449 = vtanh.f32 %v864_v25  ;;  %v540_v34 = vpop.f32.mrf.mxu0  ;;  %v868_v37 = vadd.f32 %v4174_v13, %v848_v23  ;;  %v849_v43 = vadd.f32 %v3232_v12, %v787_v33 }
 0x176   : > { %v866_v32 = vadd.f32 %v4174_v13, %v846_v27  ;;  %v847_v36 = vadd.f32 %v3229_v63, %v779_v26  ;;  %v745_v56 = vrot.slane %v729_v22, %v4159_v55  ;;  %v714_v58 = vcombine.high %v4177_v14, %v4177_v14 }
 0x177   : > { %3451 = vtanh.f32 %v865_v31  ;;  %v3238_v40 = vpop.f32.mrf.mxu0  ;;  %v869_v57 = vadd.f32 %v4174_v13, %v849_v43  ;;  %v850_v59 = vadd.f32 %v791_v49, %v540_v34  ;;  %v819_v63 = vrot.slane %v759_v48, %v4166_v4 }
 0x178   : > { %3453 = vtanh.f32 %v866_v32  ;;  %v853_v41 = vadd.f32 %v3238_v40, %v803_v38  ;;  %v867_v46 = vadd.f32 %v4174_v13, %v847_v36  ;;  %v799_v1 = vrot.slane %v738_v29, %v4166_v4 }
 0x179   : > { %v550_v44 = vpop.f32.mrf.mxu0  ;;  %3455 = vtanh.f32 %v868_v37  ;;  %v815_v7 = vrot.slane %v745_v56, %v4166_v4  ;;  %v761_v8 = vcombine.high %v745_v56, %v745_v56  ;;  %v795_v10 = vrot.slane %v714_v58, %v4166_v4 }
 0x17a   : > { %v873_v47 = vadd.f32 %v4174_v13, %v853_v41  ;;  %v870_v11 = vadd.f32 %v4174_v13, %v850_v59  ;;  %v852_v12 = vadd.f32 %v799_v1, %v550_v44  ;;  %v763_v19 = vcombine.high %v759_v48, %v759_v48 }
 0x17b   : > { %v3241_v50 = vpop.f32.mrf.mxu0  ;;  %v823_v22 = vrot.slane %v761_v8, %v4166_v4  ;;  %v851_v23 = vadd.f32 %v4186_v28, %v795_v10 }
 0x17c   : > { %v855_v51 = vadd.f32 %v3241_v50, %v811_v45  ;;  %3457 = vtanh.f32 %v873_v47  ;;  %v872_v24 = vadd.f32 %v4174_v13, %v852_v12  ;;  %v827_v31 = vrot.slane %v763_v19, %v4166_v4 }
 0x17d   : > { %v560_v60 = vpop.f32.mrf.mxu0  ;;  %3459 = vtanh.f32 %v867_v46  ;;  %v871_v33 = vadd.f32 %v4174_v13, %v851_v23 }
 0x17e   : > { %v875_v61 = vadd.f32 %v4174_v13, %v855_v51  ;;  %v854_v62 = vadd.f32 %v807_v53, %v560_v60 }
 0x17f   : > { %v3244_v0 = vpop.f32.mrf.mxu0 }
 0x180   : > { %3461 = vtanh.f32 %v875_v61  ;;  %v874_v2 = vadd.f32 %v4174_v13, %v854_v62  ;;  %v857_v3 = vadd.f32 %v3244_v0, %v819_v63 }
 0x181   : > { %v570_v6 = vpop.f32.mrf.mxu0  ;;  %3463 = vtanh.f32 %v869_v57 }
 0x182   : > { %v3450_v9 = vpop.eup %3449  ;;  %3465 = vtanh.f32 %v874_v2  ;;  %v877_v14 = vadd.f32 %v4174_v13, %v857_v3  ;;  %v856_v15 = vadd.f32 %v815_v7, %v570_v6  ;;  %v965_v3 = vand.u32 127, %v670_v52 }
 0x183   : > { %v3247_v16 = vpop.f32.mrf.mxu0  ;;  %v900_v17 = vmul.f32 %v3450_v9, %v4212_v5  ;;  %3467 = vtanh.f32 %v870_v11 }
 0x184   : > { %v3452_v18 = vpop.eup %3451  ;;  %3469 = vtanh.f32 %v877_v14  ;;  %v876_v27 = vadd.f32 %v4174_v13, %v856_v15  ;;  %v859_v28 = vadd.f32 %v3247_v16, %v827_v31  ;;  %v4258_v8 = vsub.s32 %v965_v3, %v4156_v54 }
 0x185   : > { %v3454_v20 = vpop.eup %3453  ;;  %916 = vadd.xlane.f32.xlu0 %v900_v17  ;;  %v580_v21 = vpop.f32.mrf.mxu0  ;;  %v901_v30 = vmul.f32 %v3452_v18, %v4212_v5  ;;  %3471 = vtanh.f32 %v872_v24 }
 0x186   : > { %v902_v25 = vmul.f32 %v3454_v20, %v4212_v5  ;;  %v3456_v26 = vpop.eup %3455  ;;  %v858_v29 = vadd.f32 %v823_v22, %v580_v21  ;;  %3473 = vtanh.f32 %v876_v27  ;;  %v879_v39 = vadd.f32 %v4174_v13, %v859_v28 }
 0x187   : > { %v904_v34 = vmul.f32 %v3456_v26, %v4212_v5  ;;  %3475 = vtanh.f32 %v871_v33 }
 0x188   : > { %920 = vadd.xlane.f32.xlu1 %v902_v25  ;;  %v878_v36 = vadd.f32 %v4174_v13, %v858_v29 }
 0x189   : > { %918 = vadd.xlane.f32.xlu0 %v901_v30  ;;  %v3458_v32 = vpop.eup %3457 }
 0x18a   : > { %v3460_v35 = vpop.eup %3459  ;;  %v909_v37 = vmul.f32 %v3458_v32, %v4212_v5  ;;  %3477 = vtanh.f32 %v878_v36 }
 0x18b   : > { %v903_v40 = vmul.f32 %v3460_v35, %v4212_v5  ;;  %3479 = vtanh.f32 %v879_v39 }
 0x18c   : > { %924 = vadd.xlane.f32.xlu1 %v904_v34 }
 0x18d   : > { %v3462_v38 = vpop.eup %3461  ;;  %934 = vadd.xlane.f32.xlu0 %v909_v37 }
 0x18e   : > { %v911_v41 = vmul.f32 %v3462_v38, %v4212_v5  ;;  %v3464_v42 = vpop.eup %3463 }
 0x18f   : > { %v3466_v43 = vpop.eup %3465  ;;  %v905_v44 = vmul.f32 %v3464_v42, %v4212_v5 }
 0x190   : > { %922 = vadd.xlane.f32.xlu1 %v903_v40  ;;  %v3468_v45 = vpop.eup %3467  ;;  %v910_v46 = vmul.f32 %v3466_v43, %v4212_v5 }
 0x191   : > { %938 = vadd.xlane.f32.xlu0 %v911_v41  ;;  %v3470_v47 = vpop.eup %3469  ;;  %v906_v13 = vmul.f32 %v3468_v45, %v4212_v5 }
 0x192   : > { %v3472_v48 = vpop.eup %3471  ;;  %v913_v49 = vmul.f32 %v3470_v47, %v4212_v5 }
 0x193   : > { %v3474_v50 = vpop.eup %3473  ;;  %v908_v51 = vmul.f32 %v3472_v48, %v4212_v5  ;;  %v3864_v48 = vmov 0  }
 0x194   : > { %926 = vadd.xlane.f32.xlu1 %v905_v44  ;;  %v3476_v53 = vpop.eup %3475  ;;  %v912_v56 = vmul.f32 %v3474_v50, %v4212_v5  ;;  %3447 = vset.pattern.permute.xlu0 %v3864_v48  ;;  %v4324_v50 = vsub.s32 2, %v4156_v54 }
 0x195   : > { %936 = vadd.xlane.f32.xlu0 %v910_v46  ;;  %v907_v58 = vmul.f32 %v3476_v53, %v4212_v5  ;;  %3448 = vset.pattern.permute.xlu1 %v3864_v48  ;;  %v4330_v53 = vsub.s32 3, %v4156_v54 }
 0x197   : > { %v3478_v57 = vpop.eup %3477 }
 0x198   : > { %928 = vadd.xlane.f32.xlu1 %v906_v13  ;;  %v3480_v59 = vpop.eup %3479  ;;  %v914_v60 = vmul.f32 %v3478_v57, %v4212_v5 }
 0x199   : > { %942 = vadd.xlane.f32.xlu0 %v913_v49  ;;  %v915_v61 = vmul.f32 %v3480_v59, %v4212_v5  ;;  %v4321_v49 = vsub.s32 1, %v4156_v54 }
 0x19c   : > { %932 = vadd.xlane.f32.xlu1 %v908_v51  ;;  %v4327_v51 = vsub.s32 5, %v4156_v54 }
 0x19d   : > { %940 = vadd.xlane.f32.xlu0 %v912_v56  ;;  %v4333_v56 = vsub.s32 6, %v4156_v54 }
 0x1a0   : > { %930 = vadd.xlane.f32.xlu1 %v907_v58 }
 0x1a1   : > { %944 = vadd.xlane.f32.xlu0 %v914_v60 }
 0x1a4   : > { %946 = vadd.xlane.f32.xlu1 %v915_v61  ;;  %v4339_v61 = vsub.s32 4, %v4156_v54 }
 0x20e   : > { %v4242_v62 = vpop.xlane.xlu0 %916 }
 0x20f   : > { %v969_v11 = vrot.slane %v4242_v62, %v4258_v8 }
 0x211   : > { %v4244_v63 = vpop.xlane.xlu1 %920 }
 0x212   : > { %v4246_v0 = vpop.xlane.xlu0 %918  ;;  %v977_v16 = vrot.slane %v4244_v63, %v4258_v8 }
 0x213   : > { %v973_v9 = vrot.slane %v4246_v0, %v4258_v8 }
 0x215   : > { %v4248_v1 = vpop.xlane.xlu1 %924  ;;  %v1031_v52 = vsel %vm1030_vm0, %v973_v9, %v969_v11 }
 0x216   : > { %v4250_v2 = vpop.xlane.xlu0 %934  ;;  %v1033_v17 = vsel %vm1032_vm1, %v977_v16, %v1031_v52  ;;  %v985_v24 = vrot.slane %v4248_v1, %v4258_v8  ;;  %v4347_v16 = vsub.s32 7, %v4156_v54 }
 0x217   : > { %v1005_v19 = vrot.slane %v4250_v2, %v4258_v8 }
 0x219   : > { %v4253_v6 = vpop.xlane.xlu1 %922 }
 0x21a   : > { %v4255_v7 = vpop.xlane.xlu0 %938  ;;  %v981_v14 = vrot.slane %v4253_v6, %v4258_v8 }
 0x21b   : > { %v1013_v29 = vrot.slane %v4255_v7, %v4258_v8 }
 0x21c   : > { %v1035_v20 = vsel %vm1034_vm2, %v981_v14, %v1033_v17 }
 0x21d   : > { %v4260_v5 = vpop.xlane.xlu1 %926  ;;  %v1037_v33 = vsel %vm1036_vm3, %v985_v24, %v1035_v20 }
 0x21e   : > { %v4264_v10 = vpop.xlane.xlu0 %936  ;;  %v989_v21 = vrot.slane %v4260_v5, %v4258_v8 }
 0x21f   : > { %v1009_v25 = vrot.slane %v4264_v10, %v4258_v8 }
 0x220   : > { %v1039_v37 = vsel %vm1038_vm4, %v989_v21, %v1037_v33 }
 0x221   : > { %v4268_v12 = vpop.xlane.xlu1 %928 }
 0x222   : > { %v4273_v15 = vpop.xlane.xlu0 %942  ;;  %v993_v26 = vrot.slane %v4268_v12, %v4258_v8 }
 0x223   : > { %v1021_v28 = vrot.slane %v4273_v15, %v4258_v8 }
 0x224   : > { %v1041_v40 = vsel %vm1040_vm5, %v993_v26, %v1039_v37 }
 0x225   : > { %v4278_v18 = vpop.xlane.xlu1 %932 }
 0x226   : > { %v1001_v22 = vrot.slane %v4278_v18, %v4258_v8  ;;  %v4287_v23 = vpop.xlane.xlu0 %940 }
 0x227   : > { %v1017_v27 = vrot.slane %v4287_v23, %v4258_v8 }
 0x228   : > { %v1044_v30 = vsel %vm1030_vm0, %v1005_v19, %v1001_v22 }
 0x229   : > { %v1045_v31 = vsel %vm1032_vm1, %v1009_v25, %v1044_v30  ;;  %v931_v32 = vpop.xlane.xlu1 %930 }
 0x22a   : > { %v1046_v34 = vsel %vm1034_vm2, %v1013_v29, %v1045_v31  ;;  %v997_v35 = vrot.slane %v931_v32, %v4258_v8  ;;  %v4306_v36 = vpop.xlane.xlu0 %944 }
 0x22b   : > { %v1047_v38 = vsel %vm1036_vm3, %v1017_v27, %v1046_v34  ;;  %v1025_v39 = vrot.slane %v4306_v36, %v4258_v8 }
 0x22c   : > { %v1043_v41 = vsel %vm1042_vm6, %v997_v35, %v1041_v40  ;;  %v1048_v42 = vsel %vm1038_vm4, %v1021_v28, %v1047_v38 }
 0x22d   : > { %v947_v43 = vpop.xlane.xlu1 %946  ;;  %v1054_v44 = vsel %vm1053_vm7, %v1043_v41, -inf  ;;  %v1049_v45 = vsel %vm1040_vm5, %v1025_v39, %v1048_v42 }
 0x22e   : > { %v1029_v46 = vrot.slane %v947_v43, %v4258_v8  ;;  %1055 = vmax.xlane.f32.xlu0 %v1054_v44 }
 0x230   : > { %v1050_v47 = vsel %vm1042_vm6, %v1029_v46, %v1049_v45 }
 0x231   : > { %v1057_v13 = vsel %vm1053_vm7, %v1050_v47, -inf }
 0x232   : > { %1058 = vmax.xlane.f32.xlu1 %v1057_v13 }
 0x2b7   : > { %v1056_v57 = vpop.xlane.xlu0 %1055 }
 0x2b8   : > { %v1065_v58 = vrot.slane %v1056_v57, %v4166_v4  ;;  %v1069_v59 = vrot.slane %v1056_v57, %v4321_v49  ;;  %v1073_v60 = vrot.slane %v1056_v57, %v4324_v50  ;;  %v1085_v3 = vrot.slane %v1056_v57, %v4327_v51 }
 0x2b9   : > { %v1077_v9 = vrot.slane %v1056_v57, %v4330_v53  ;;  %v1089_v17 = vrot.slane %v1056_v57, %v4333_v56  ;;  %v1081_v22 = vrot.slane %v1056_v57, %v4339_v61 }
 0x2ba   : > { %v1142_v11 = vsub.f32 %v4242_v62, %v1065_v58  ;;  %v1143_v52 = vsub.f32 %v4246_v0, %v1069_v59  ;;  %v1144_v14 = vsub.f32 %v4244_v63, %v1073_v60  ;;  %v1147_v19 = vsub.f32 %v4260_v5, %v1085_v3 }
 0x2bb   : > { %v1145_v24 = vsub.f32 %v4253_v6, %v1077_v9  ;;  %v1093_v62 = vrot.slane %v1056_v57, %v4347_v16  ;;  %v1148_v0 = vsub.f32 %v4268_v12, %v1089_v17  ;;  %v1059_v54 = vpop.xlane.xlu1 %1058  ;;  %v1146_v26 = vsub.f32 %v4248_v1, %v1081_v22 }
 0x2bc   : > { %v1158_v20 = vmul.f32 1.442695, %v1142_v11  ;;  %v1160_v21 = vmul.f32 1.442695, %v1143_v52  ;;  %v1162_v25 = vmul.f32 1.442695, %v1144_v14  ;;  %v1097_v5 = vrot.slane %v1059_v54, %v4166_v4 }
 0x2bd   : > { %v1168_v63 = vmul.f32 1.442695, %v1147_v19  ;;  %v1164_v27 = vmul.f32 1.442695, %v1145_v24  ;;  %v1149_v29 = vsub.f32 %v931_v32, %v1093_v62  ;;  %v1170_v30 = vmul.f32 1.442695, %v1148_v0 }
 0x2be   : > { %3481 = vpow2.f32 %v1158_v20  ;;  %v1125_v6 = vrot.slane %v1059_v54, %v4347_v16  ;;  %v1166_v31 = vmul.f32 1.442695, %v1146_v26  ;;  %v1150_v33 = vsub.f32 %v4278_v18, %v1097_v5 }
 0x2bf   : > { %3483 = vpow2.f32 %v1160_v21  ;;  %v1172_v12 = vmul.f32 1.442695, %v1149_v29  ;;  %v1101_v28 = vrot.slane %v1059_v54, %v4321_v49  ;;  %v1105_v32 = vrot.slane %v1059_v54, %v4324_v50 }
 0x2c0   : > { %3485 = vpow2.f32 %v1162_v25  ;;  %v1157_v34 = vsub.f32 %v947_v43, %v1125_v6  ;;  %v1174_v1 = vmul.f32 1.442695, %v1150_v33  ;;  %v1109_v40 = vrot.slane %v1059_v54, %v4330_v53 }
 0x2c1   : > { %3487 = vpow2.f32 %v1168_v63  ;;  %v1151_v37 = vsub.f32 %v4250_v2, %v1101_v28  ;;  %v1152_v41 = vsub.f32 %v4264_v10, %v1105_v32  ;;  %v1113_v44 = vrot.slane %v1059_v54, %v4339_v61 }
 0x2c2   : > { %3489 = vpow2.f32 %v1164_v27  ;;  %v1188_v38 = vmul.f32 1.442695, %v1157_v34  ;;  %v1153_v45 = vsub.f32 %v4255_v7, %v1109_v40  ;;  %v1117_v13 = vrot.slane %v1059_v54, %v4327_v51 }
 0x2c3   : > { %3491 = vpow2.f32 %v1170_v30  ;;  %v1176_v42 = vmul.f32 1.442695, %v1151_v37  ;;  %v1178_v46 = vmul.f32 1.442695, %v1152_v41  ;;  %v1154_v48 = vsub.f32 %v4287_v23, %v1113_v44 }
 0x2c4   : > { %3493 = vpow2.f32 %v1166_v31  ;;  %v1180_v57 = vmul.f32 1.442695, %v1153_v45  ;;  %v1121_v59 = vrot.slane %v1059_v54, %v4333_v56  ;;  %v1155_v60 = vsub.f32 %v4273_v15, %v1117_v13 }
 0x2c5   : > { %3495 = vpow2.f32 %v1172_v12  ;;  %v1182_v3 = vmul.f32 1.442695, %v1154_v48 }
 0x2c6   : > { %3497 = vpow2.f32 %v1174_v1  ;;  %v1156_v23 = vsub.f32 %v4306_v36, %v1121_v59  ;;  %v1184_v11 = vmul.f32 1.442695, %v1155_v60 }
 0x2c7   : > { %3499 = vpow2.f32 %v1188_v38 }
 0x2c8   : > { %3501 = vpow2.f32 %v1176_v42  ;;  %v1186_v14 = vmul.f32 1.442695, %v1156_v23 }
 0x2c9   : > { %3503 = vpow2.f32 %v1178_v46 }
 0x2ca   : > { %3505 = vpow2.f32 %v1180_v57 }
 0x2cb   : > { %v4360_v35 = vpop.eup %3481  ;;  %3507 = vpow2.f32 %v1182_v3 }
 0x2cc   : > { %v4364_v39 = vpop.eup %3483  ;;  %1207 = vperm.xlu0 %3447, %v4360_v35   ;;  %3509 = vpow2.f32 %v1184_v11 }
 0x2cd   : > { %1210 = vperm.xlu1 %3448, %v4364_v39   ;;  %v4368_v18 = vpop.eup %3485  ;;  %3511 = vpow2.f32 %v1186_v14 }
 0x2ce   : > { %v4372_v43 = vpop.eup %3487 }
 0x2cf   : > { %v4376_v2 = vpop.eup %3489 }
 0x2d0   : > { %1222 = vperm.xlu0 %3447, %v4372_v43   ;;  %v4380_v47 = vpop.eup %3491 }
 0x2d1   : > { %1213 = vperm.xlu1 %3448, %v4368_v18   ;;  %v4384_v10 = vpop.eup %3493 }
 0x2d2   : > { %v4388_v58 = vpop.eup %3495 }
 0x2d3   : > { %v4392_v7 = vpop.eup %3497 }
 0x2d4   : > { %1225 = vperm.xlu0 %3447, %v4380_v47   ;;  %v4396_v9 = vpop.eup %3499 }
 0x2d5   : > { %1216 = vperm.xlu1 %3448, %v4376_v2   ;;  %v4401_v52 = vpop.eup %3501 }
 0x2d6   : > { %v4404_v17 = vpop.eup %3503 }
 0x2d7   : > { %v4407_v15 = vpop.eup %3505 }
 0x2d8   : > { %1228 = vperm.xlu0 %3447, %v4388_v58   ;;  %v4410_v19 = vpop.eup %3507 }
 0x2d9   : > { %1219 = vperm.xlu1 %3448, %v4384_v10   ;;  %v4413_v36 = vpop.eup %3509 }
 0x2da   : > { %v4416_v20 = vpop.eup %3511 }
 0x2dc   : > { %1252 = vperm.xlu0 %3447, %v4396_v9  }
 0x2dd   : > { %1231 = vperm.xlu1 %3448, %v4392_v7  }
 0x2e1   : > { %1234 = vperm.xlu1 %3448, %v4401_v52  }
 0x2e5   : > { %1237 = vperm.xlu1 %3448, %v4404_v17  }
 0x2e9   : > { %1240 = vperm.xlu1 %3448, %v4407_v15  }
 0x2ed   : > { %1243 = vperm.xlu1 %3448, %v4410_v19  }
 0x2f1   : > { %1246 = vperm.xlu1 %3448, %v4413_v36  }
 0x2f5   : > { %1249 = vperm.xlu1 %3448, %v4416_v20  }
 0x347   : > { %v1208_v21 = vpop.permute.xlu0 %1207 }
 0x348   : > { %v1211_v22 = vpop.permute.xlu1 %1210  ;;  %v1257_v0 = vrot.slane %v1208_v21, %v4258_v8 }
 0x349   : > { %v1261_v62 = vrot.slane %v1211_v22, %v4258_v8 }
 0x34b   : > { %v1223_v25 = vpop.permute.xlu0 %1222  ;;  %v1318_v5 = vsel %vm1030_vm0, %v1261_v62, %v1257_v0 }
 0x34c   : > { %v1214_v24 = vpop.permute.xlu1 %1213  ;;  %v1277_v33 = vrot.slane %v1223_v25, %v4258_v8 }
 0x34d   : > { %v1265_v26 = vrot.slane %v1214_v24, %v4258_v8 }
 0x34f   : > { %v1226_v54 = vpop.permute.xlu0 %1225  ;;  %v1319_v30 = vsel %vm1032_vm1, %v1265_v26, %v1318_v5 }
 0x350   : > { %v1217_v63 = vpop.permute.xlu1 %1216  ;;  %v1281_v28 = vrot.slane %v1226_v54, %v4258_v8 }
 0x351   : > { %v1269_v27 = vrot.slane %v1217_v63, %v4258_v8 }
 0x353   : > { %v1229_v31 = vpop.permute.xlu0 %1228  ;;  %v1320_v12 = vsel %vm1034_vm2, %v1269_v27, %v1319_v30 }
 0x354   : > { %v1220_v29 = vpop.permute.xlu1 %1219  ;;  %v1285_v1 = vrot.slane %v1229_v31, %v4258_v8 }
 0x355   : > { %v1273_v6 = vrot.slane %v1220_v29, %v4258_v8 }
 0x357   : > { %v1321_v34 = vsel %vm1036_vm3, %v1273_v6, %v1320_v12  ;;  %v1253_v14 = vpop.permute.xlu0 %1252 }
 0x358   : > { %v1232_v32 = vpop.permute.xlu1 %1231  ;;  %v1322_v37 = vsel %vm1038_vm4, %v1277_v33, %v1321_v34  ;;  %v1317_v0 = vrot.slane %v1253_v14, %v4258_v8 }
 0x359   : > { %v1323_v38 = vsel %vm1040_vm5, %v1281_v28, %v1322_v37  ;;  %v1289_v57 = vrot.slane %v1232_v32, %v4258_v8 }
 0x35a   : > { %v1324_v40 = vsel %vm1042_vm6, %v1285_v1, %v1323_v38 }
 0x35b   : > { %v1334_v41 = vsel %vm1053_vm7, %v1324_v40, 0.0 }
 0x35c   : > { %v1235_v42 = vpop.permute.xlu1 %1234  ;;  %1335 = vadd.xlane.f32.xlu1 %v1334_v41 }
 0x35d   : > { %v1293_v13 = vrot.slane %v1235_v42, %v4258_v8 }
 0x35f   : > { %v1325_v23 = vsel %vm1030_vm0, %v1293_v13, %v1289_v57 }
 0x360   : > { %v1238_v44 = vpop.permute.xlu1 %1237 }
 0x361   : > { %v1297_v48 = vrot.slane %v1238_v44, %v4258_v8 }
 0x363   : > { %v1326_v21 = vsel %vm1032_vm1, %v1297_v48, %v1325_v23 }
 0x364   : > { %v1241_v45 = vpop.permute.xlu1 %1240 }
 0x365   : > { %v1301_v59 = vrot.slane %v1241_v45, %v4258_v8 }
 0x367   : > { %v1327_v22 = vsel %vm1034_vm2, %v1301_v59, %v1326_v21  ;;  %v436_v21 = vld [vmem:[#allocation8 + $0x1e0] sm:$0xff] }
 0x368   : > { %v1244_v46 = vpop.permute.xlu1 %1243 }
 0x369   : > { %v1305_v3 = vrot.slane %v1244_v46, %v4258_v8 }
 0x36b   : > { %v1328_v25 = vsel %vm1036_vm3, %v1305_v3, %v1327_v22  ;;  %v439_v3 = vld [vmem:[#allocation8 + $0x1f8] sm:$0xff] }
 0x36c   : > { %v1247_v60 = vpop.permute.xlu1 %1246  ;;  %3283 = vmatprep.subr.mxu0 %v439_v3  ;;  %v435_v22 = vld [vmem:[#allocation8 + $0x1d8] sm:$0xff] }
 0x36d   : > { %v1309_v11 = vrot.slane %v1247_v60, %v4258_v8  ;;  %3284 = vmatpush3.msra.mxu0 %v439_v3  ;;  %v361_v3 = vld [vmem:[%s4122_s17 + $0x30] sm:$0xff] }
 0x36f   : > { %v1329_v63 = vsel %vm1038_vm4, %v1309_v11, %v1328_v25  ;;  %v437_v11 = vld [vmem:[#allocation8 + $0x1e8] sm:$0xff] }
 0x370   : > { %v1250_v24 = vpop.permute.xlu1 %1249 }
 0x371   : > { %v1313_v62 = vrot.slane %v1250_v24, %v4258_v8 }
 0x373   : > { %v1330_v54 = vsel %vm1040_vm5, %v1313_v62, %v1329_v63 }
 0x374   : > { %v1331_v26 = vsel %vm1042_vm6, %v1317_v0, %v1330_v54  ;;  %v434_v54 = vld [vmem:[#allocation8 + $0x1d0] sm:$0xff] }
 0x375   : > { %v1337_v27 = vsel %vm1053_vm7, %v1331_v26, 0.0  ;;  %v433_v26 = vld [vmem:[#allocation8 + $0x1c8] sm:$0xff] }
 0x376   : > { %1338 = vadd.xlane.f32.xlu0 %v1337_v27 }
 0x3e5   : > { %v1336_v5 = vpop.xlane.xlu1 %1335 }
 0x3e6   : > { %v1349_v29 = vrot.slane %v1336_v5, %v4321_v49  ;;  %v1345_v30 = vrot.slane %v1336_v5, %v4166_v4  ;;  %v1353_v6 = vrot.slane %v1336_v5, %v4324_v50  ;;  %v1357_v31 = vrot.slane %v1336_v5, %v4330_v53 }
 0x3e7   : > { %v1361_v33 = vrot.slane %v1336_v5, %v4339_v61  ;;  %v1365_v12 = vrot.slane %v1336_v5, %v4327_v51  ;;  %v1369_v28 = vrot.slane %v1336_v5, %v4333_v56  ;;  %v1373_v57 = vrot.slane %v1336_v5, %v4347_v16  ;;  %v432_v5 = vld [vmem:[#allocation8 + $0x1c0] sm:$0xff] }
 0x3e8   : > { %3513 = vrcp.f32 %v1349_v29 }
 0x3e9   : > { %3515 = vrcp.f32 %v1345_v30 }
 0x3ea   : > { %3517 = vrcp.f32 %v1353_v6 }
 0x3eb   : > { %3519 = vrcp.f32 %v1357_v31 }
 0x3ec   : > { %3521 = vrcp.f32 %v1361_v33 }
 0x3ed   : > { %3523 = vrcp.f32 %v1365_v12 }
 0x3ee   : > { %3525 = vrcp.f32 %v1369_v28  ;;  %v422_v28 = vld [vmem:[#allocation8 + $0x178] sm:$0xff] }
 0x3ef   : > { %3339 = vmatprep.subr.mxu1 %v422_v28 }
 0x3f0   : > { %3340 = vmatpush3.msra.mxu1 %v422_v28 }
 0x3f5   : > { %v3514_v34 = vpop.eup %3513 }
 0x3f6   : > { %v3516_v1 = vpop.eup %3515  ;;  %v1425_v32 = vmul.f32 %v3514_v34, %v4364_v39 }
 0x3f7   : > { %v3518_v37 = vpop.eup %3517  ;;  %v1423_v38 = vmul.f32 %v3516_v1, %v4360_v35 }
 0x3f8   : > { %v3520_v40 = vpop.eup %3519  ;;  %1461 = vperm.xlu1 %3448, %v1425_v32   ;;  %v1427_v41 = vmul.f32 %v3518_v37, %v4368_v18  ;;  %v421_v32 = vld [vmem:[#allocation8 + $0x170] sm:$0xff]  ;;  %v420_v37 = vld [vmem:[#allocation8 + $0x168] sm:$0xff] }
 0x3f9   : > { %1456 = vperm.xlu0 %3447, %v1423_v38   ;;  %v1429_v42 = vmul.f32 %v3520_v40, %v4376_v2  ;;  %v3522_v44 = vpop.eup %3521  ;;  %3341 = vmatprep.subr.mxu1 %v421_v32 }
 0x3fa   : > { %v1431_v46 = vmul.f32 %v3522_v44, %v4384_v10  ;;  %v3524_v13 = vpop.eup %3523  ;;  %3342 = vmatpush3.msra.mxu1 %v421_v32  ;;  %v418_v44 = vld [vmem:[#allocation8 + $0x158] sm:$0xff] }
 0x3fb   : > { %v1433_v18 = vmul.f32 %v3524_v13, %v4372_v43  ;;  %v3526_v2 = vpop.eup %3525  ;;  %v438_v43 = vld [vmem:[#allocation8 + $0x1f0] sm:$0xff]  ;;  %3343 = vmatprep.subr.mxu1 %v420_v37  ;;  %v355_v13 = vld [vmem:[%s4122_s17] sm:$0xff] }
 0x3fc   : > { %1466 = vperm.xlu1 %3448, %v1427_v41   ;;  %v1435_v60 = vmul.f32 %v3526_v2, %v4380_v47  ;;  %3285 = vmatprep.subr.mxu0 %v438_v43  ;;  %v419_v41 = vld [vmem:[#allocation8 + $0x160] sm:$0xff]  ;;  %v413_v2 = vld [vmem:[#allocation8 + $0x130] sm:$0xff] }
 0x3fd   : > { %1471 = vperm.xlu0 %3447, %v1429_v42   ;;  %3286 = vmatpush3.msra.mxu0 %v438_v43  ;;  %v425_v42 = vld [vmem:[#allocation8 + $0x188] sm:$0xff]  ;;  %v362_v43 = vld [vmem:[%s4122_s17 + $0x38] sm:$0xff] }
 0x3fe   : > { %3287 = vmatprep.subr.mxu0 %v437_v11  ;;  %3344 = vmatpush3.msra.mxu1 %v420_v37 }
 0x3ff   : > { %v1339_v45 = vpop.xlane.xlu0 %1338  ;;  %3288 = vmatpush3.msra.mxu0 %v437_v11  ;;  %3345 = vmatprep.subr.mxu1 %v419_v41  ;;  %v410_v11 = vld [vmem:[#allocation8 + $0x118] sm:$0xff] }
 0x400   : > { %v1381_v39 = vrot.slane %v1339_v45, %v4321_v49  ;;  %v1377_v48 = vrot.slane %v1339_v45, %v4166_v4  ;;  %v1385_v35 = vrot.slane %v1339_v45, %v4324_v50  ;;  %v1389_v59 = vrot.slane %v1339_v45, %v4330_v53  ;;  %3289 = vmatprep.subr.mxu0 %v436_v21 }
 0x401   : > { %1476 = vperm.xlu0 %3447, %v1431_v46   ;;  %v1405_v10 = vrot.slane %v1339_v45, %v4347_v16  ;;  %v1393_v23 = vrot.slane %v1339_v45, %v4339_v61  ;;  %v1397_v14 = vrot.slane %v1339_v45, %v4327_v51  ;;  %3290 = vmatpush3.msra.mxu0 %v436_v21  ;;  %v417_v46 = vld [vmem:[#allocation8 + $0x150] sm:$0xff] }
 0x402   : > { %3527 = vrcp.f32 %v1381_v39  ;;  %v1401_v62 = vrot.slane %v1339_v45, %v4333_v56  ;;  %3291 = vmatprep.subr.mxu0 %v435_v22  ;;  %3346 = vmatpush3.msra.mxu1 %v419_v41  ;;  %v356_v39 = vld [vmem:[%s4122_s17 + $0x8] sm:$0xff]  ;;  %v409_v21 = vld [vmem:[#allocation8 + $0x110] sm:$0xff] }
 0x403   : > { %3529 = vrcp.f32 %v1377_v48  ;;  %3292 = vmatpush3.msra.mxu0 %v435_v22  ;;  %3347 = vmatprep.subr.mxu1 %v418_v44  ;;  %v416_v48 = vld [vmem:[#allocation8 + $0x148] sm:$0xff] }
 0x404   : > { %3531 = vrcp.f32 %v1385_v35  ;;  %3293 = vmatprep.subr.mxu0 %v434_v54  ;;  %3348 = vmatpush3.msra.mxu1 %v418_v44  ;;  %v357_v35 = vld [vmem:[%s4122_s17 + $0x10] sm:$0xff]  ;;  %v408_v22 = vld [vmem:[#allocation8 + $0x108] sm:$0xff] }
 0x405   : > { %1481 = vperm.xlu0 %3447, %v1433_v18   ;;  %3533 = vrcp.f32 %v1373_v57  ;;  %3294 = vmatpush3.msra.mxu0 %v434_v54  ;;  %v358_v57 = vld [vmem:[%s4122_s17 + $0x18] sm:$0xff]  ;;  %v369_v54 = vld [vmem:[%s4122_s17 + $0x70] sm:$0xff] }
 0x406   : > { %3535 = vrcp.f32 %v1389_v59  ;;  %3295 = vmatprep.subr.mxu0 %v433_v26  ;;  %3349 = vmatprep.subr.mxu1 %v417_v46  ;;  %v414_v18 = vld [vmem:[#allocation8 + $0x138] sm:$0xff]  ;;  %v359_v59 = vld [vmem:[%s4122_s17 + $0x20] sm:$0xff] }
 0x407   : > { %3537 = vrcp.f32 %v1405_v10  ;;  %3296 = vmatpush3.msra.mxu0 %v433_v26  ;;  %3315 = vmatprep.mubr.f32.mxu0 %v355_v13  ;;  %v360_v10 = vld [vmem:[%s4122_s17 + $0x28] sm:$0xff]  ;;  %v370_v26 = vld [vmem:[%s4122_s17 + $0x78] sm:$0xff] }
 0x408   : > { %3539 = vrcp.f32 %v1393_v23  ;;  %3297 = vmatprep.subr.mxu0 %v432_v5  ;;  %3350 = vmatpush3.msra.mxu1 %v417_v46  ;;  %v411_v23 = vld [vmem:[#allocation8 + $0x120] sm:$0xff]  ;;  %v3647_v46 = vld [vmem:[%s4115_s24 + $0x30] sm:$0xff] }
 0x409   : > { %1486 = vperm.xlu0 %3447, %v1435_v60   ;;  %3541 = vrcp.f32 %v1397_v14  ;;  %3298 = vmatpush3.msra.mxu0 %v432_v5  ;;  %v412_v60 = vld [vmem:[#allocation8 + $0x128] sm:$0xff]  ;;  %v363_v14 = vld [vmem:[%s4122_s17 + $0x40] sm:$0xff] }
 0x40a   : > { %3543 = vrcp.f32 %v1401_v62  ;;  %3351 = vmatprep.subr.mxu1 %v416_v48  ;;  %v366_v62 = vld [vmem:[%s4122_s17 + $0x58] sm:$0xff] }
 0x40b   : > { %3352 = vmatpush3.msra.mxu1 %v416_v48 }
 0x40f   : > { %v3528_v47 = vpop.eup %3527 }
 0x410   : > { %v3530_v24 = vpop.eup %3529  ;;  %v1441_v25 = vmul.f32 %v3528_v47, %v4401_v52  ;;  %v364_v47 = vld [vmem:[%s4122_s17 + $0x48] sm:$0xff] }
 0x411   : > { %v3532_v0 = vpop.eup %3531  ;;  %v1439_v63 = vmul.f32 %v3530_v24, %v4392_v7  ;;  %v431_v7 = vld [vmem:[#allocation8 + $0x1b8] sm:$0xff]  ;;  %v365_v24 = vld [vmem:[%s4122_s17 + $0x50] sm:$0xff] }
 0x412   : > { %v3534_v27 = vpop.eup %3533  ;;  %1501 = vperm.xlu1 %3448, %v1441_v25   ;;  %v1443_v29 = vmul.f32 %v3532_v0, %v4404_v17  ;;  %3299 = vmatprep.subr.mxu0 %v431_v7  ;;  %v430_v17 = vld [vmem:[#allocation8 + $0x1b0] sm:$0xff]  ;;  %v407_v25 = vld [vmem:[#allocation8 + $0x100] sm:$0xff] }
 0x413   : > { %1496 = vperm.xlu0 %3447, %v1439_v63   ;;  %v3536_v52 = vpop.eup %3535  ;;  %v1437_v30 = vmul.f32 %v3534_v27, %v4388_v58  ;;  %3300 = vmatpush3.msra.mxu0 %v431_v7  ;;  %v429_v58 = vld [vmem:[#allocation8 + $0x1a8] sm:$0xff]  ;;  %v367_v0 = vld [vmem:[%s4122_s17 + $0x60] sm:$0xff] }
 0x414   : > { %v3538_v6 = vpop.eup %3537  ;;  %v1445_v31 = vmul.f32 %v3536_v52, %v4407_v15  ;;  %3301 = vmatprep.subr.mxu0 %v430_v17  ;;  %v428_v15 = vld [vmem:[#allocation8 + $0x1a0] sm:$0xff]  ;;  %v368_v63 = vld [vmem:[%s4122_s17 + $0x68] sm:$0xff] }
 0x415   : > { %v3540_v33 = vpop.eup %3539  ;;  %v1453_v12 = vmul.f32 %v3538_v6, %v4396_v9  ;;  %3302 = vmatpush3.msra.mxu0 %v430_v17  ;;  %v427_v9 = vld [vmem:[#allocation8 + $0x198] sm:$0xff]  ;;  %v3641_v52 = vld [vmem:[%s4115_s24 + $0x8] sm:$0xff]  ;;  %v3642_v6 = vld [vmem:[%s4115_s24] sm:$0xff] }
 0x416   : > { %1506 = vperm.xlu1 %3448, %v1443_v29   ;;  %v1447_v34 = vmul.f32 %v3540_v33, %v4410_v19  ;;  %3303 = vmatprep.subr.mxu0 %v429_v58  ;;  %v3542_v1 = vpop.eup %3541  ;;  %v426_v19 = vld [vmem:[#allocation8 + $0x190] sm:$0xff] }
 0x417   : > { %1491 = vperm.xlu0 %3447, %v1437_v30   ;;  %3304 = vmatpush3.msra.mxu0 %v429_v58  ;;  %v1449_v38 = vmul.f32 %v3542_v1, %v4413_v36  ;;  %v3544_v40 = vpop.eup %3543  ;;  %v424_v36 = vld [vmem:[#allocation8 + $0x180] sm:$0xff] }
 0x418   : > { %3305 = vmatprep.subr.mxu0 %v428_v15  ;;  %v1451_v45 = vmul.f32 %v3544_v40, %v4416_v20  ;;  %v415_v20 = vld [vmem:[#allocation8 + $0x140] sm:$0xff] }
 0x419   : > { %3306 = vmatpush3.msra.mxu0 %v428_v15  ;;  %3353 = vmatprep.subr.mxu1 %v415_v20 }
 0x41a   : > { %1511 = vperm.xlu1 %3448, %v1445_v31   ;;  %3307 = vmatprep.subr.mxu0 %v427_v9 }
 0x41b   : > { %1531 = vperm.xlu0 %3447, %v1453_v12   ;;  %3308 = vmatpush3.msra.mxu0 %v427_v9  ;;  %v3643_v12 = vld [vmem:[%s4115_s24 + $0x10] sm:$0xff]  ;;  %v3645_v9 = vld [vmem:[%s4115_s24 + $0x20] sm:$0xff] }
 0x41c   : > { %3309 = vmatprep.subr.mxu0 %v426_v19  ;;  %3354 = vmatpush3.msra.mxu1 %v415_v20 }
 0x41d   : > { %3310 = vmatpush3.msra.mxu0 %v426_v19  ;;  %3355 = vmatprep.subr.mxu1 %v414_v18  ;;  %v3646_v19 = vld [vmem:[%s4115_s24 + $0x28] sm:$0xff] }
 0x41e   : > { %1516 = vperm.xlu1 %3448, %v1447_v34   ;;  %3311 = vmatprep.subr.mxu0 %v425_v42  ;;  %v3644_v34 = vld [vmem:[%s4115_s24 + $0x18] sm:$0xff] }
 0x41f   : > { %3312 = vmatpush3.msra.mxu0 %v425_v42  ;;  %3356 = vmatpush3.msra.mxu1 %v414_v18 }
 0x420   : > { %3313 = vmatprep.subr.mxu0 %v424_v36  ;;  %3357 = vmatprep.subr.mxu1 %v413_v2 }
 0x421   : > { %3314 = vmatpush3.msra.mxu0 %v424_v36  ;;  %3358 = vmatpush3.msra.mxu1 %v413_v2 }
 0x422   : > { %1521 = vperm.xlu1 %3448, %v1449_v38   ;;  %3316 = vmatmul.mubr.f32.vlgmr.msra.gmra.mxu0 %v356_v39 }
 0x423   : > { %3318 = vmatprep.mubr.f32.mxu0 %v357_v35  ;;  %3359 = vmatprep.subr.mxu1 %v412_v60 }
 0x424   : > { %3360 = vmatpush3.msra.mxu1 %v412_v60 }
 0x425   : > { %3361 = vmatprep.subr.mxu1 %v411_v23 }
 0x426   : > { %1526 = vperm.xlu1 %3448, %v1451_v45   ;;  %3319 = vmatmul.mubr.f32.gmra.mxu0 %v358_v57 }
 0x427   : > { %3321 = vmatprep.mubr.f32.mxu0 %v359_v59  ;;  %3362 = vmatpush3.msra.mxu1 %v411_v23 }
 0x428   : > { %3363 = vmatprep.subr.mxu1 %v410_v11 }
 0x429   : > { %3364 = vmatpush3.msra.mxu1 %v410_v11 }
 0x42a   : > { %3322 = vmatmul.mubr.f32.gmra.mxu0 %v360_v10  ;;  %3365 = vmatprep.subr.mxu1 %v409_v21 }
 0x42b   : > { %3324 = vmatprep.mubr.f32.mxu0 %v361_v3  ;;  %3366 = vmatpush3.msra.mxu1 %v409_v21 }
 0x42c   : > { %3367 = vmatprep.subr.mxu1 %v408_v22 }
 0x42d   : > { %3368 = vmatpush3.msra.mxu1 %v408_v22 }
 0x42e   : > { %3325 = vmatmul.mubr.f32.gmra.mxu0 %v362_v43  ;;  %3369 = vmatprep.subr.mxu1 %v407_v25 }
 0x42f   : > { %3327 = vmatprep.mubr.f32.mxu0 %v363_v14  ;;  %3370 = vmatpush3.msra.mxu1 %v407_v25  ;;  %v3648_v25 = vld [vmem:[%s4115_s24 + $0x48] sm:$0xff] }
 0x432   : > { %3328 = vmatmul.mubr.f32.gmra.mxu0 %v364_v47 }
 0x433   : > { %3330 = vmatprep.mubr.f32.mxu0 %v365_v24 }
 0x436   : > { %3331 = vmatmul.mubr.f32.gmra.mxu0 %v366_v62 }
 0x437   : > { %3333 = vmatprep.mubr.f32.mxu0 %v367_v0  ;;  %v3649_v0 = vld [vmem:[%s4115_s24 + $0x40] sm:$0xff] }
 0x43a   : > { %3334 = vmatmul.mubr.f32.gmra.mxu0 %v368_v63 }
 0x43b   : > { %3336 = vmatprep.mubr.f32.mxu0 %v369_v54 }
 0x43e   : > { %3337 = vmatmul.mubr.f32.gmra.mxu0 %v370_v26 }
 0x473   : > { %v1462_v27 = vpop.permute.xlu1 %1461 }
 0x474   : > { %v1457_v5 = vpop.permute.xlu0 %1456  ;;  %v1535_v30 = vmul.f32 %v3641_v52, %v1462_v27 }
 0x475   : > { %v1534_v7 = vmul.f32 %v3642_v6, %v1457_v5 }
 0x476   : > { %v1556_v58 = vrot.slane %v1535_v30, 4 }
 0x477   : > { %v1467_v31 = vpop.permute.xlu1 %1466  ;;  %v1550_v28 = vrot.slane %v1534_v7, 4 }
 0x478   : > { %v1472_v29 = vpop.permute.xlu0 %1471  ;;  %v1536_v17 = vmul.f32 %v3643_v12, %v1467_v31  ;;  %v1557_v38 = vadd.f32 %v1556_v58, %v1535_v30  ;;  %v3651_v58 = vld [vmem:[%s4115_s24 + $0x38] sm:$0xff] }
 0x479   : > { %v1537_v1 = vmul.f32 %v3644_v34, %v1472_v29  ;;  %v1551_v40 = vadd.f32 %v1550_v28, %v1534_v7  ;;  %v3650_v7 = vld [vmem:[%s4115_s24 + $0x50] sm:$0xff] }
 0x47a   : > { %v1562_v32 = vrot.slane %v1536_v17, 4  ;;  %v1558_v39 = vrot.slane %v1557_v38, 2 }
 0x47b   : > { %v1568_v42 = vrot.slane %v1537_v1, 4  ;;  %v1552_v48 = vrot.slane %v1551_v40, 2 }
 0x47c   : > { %v1477_v33 = vpop.permute.xlu0 %1476  ;;  %v1563_v45 = vadd.f32 %v1562_v32, %v1536_v17  ;;  %v1559_v59 = vadd.f32 %v1558_v39, %v1557_v38 }
 0x47d   : > { %v1538_v37 = vmul.f32 %v3645_v9, %v1477_v33  ;;  %v1569_v35 = vadd.f32 %v1568_v42, %v1537_v1  ;;  %v1553_v10 = vadd.f32 %v1552_v48, %v1551_v40 }
 0x47e   : > { %v1564_v18 = vrot.slane %v1563_v45, 2  ;;  %v1560_v21 = vrot.slane %v1559_v59, 1 }
 0x47f   : > { %v1574_v36 = vrot.slane %v1538_v37, 4  ;;  %v1570_v3 = vrot.slane %v1569_v35, 2  ;;  %v1554_v47 = vrot.slane %v1553_v10, 1 }
 0x480   : > { %v1482_v15 = vpop.permute.xlu0 %1481  ;;  %v1565_v43 = vadd.f32 %v1564_v18, %v1563_v45  ;;  %v4508_v52 = vadd.f32 %v1560_v21, %v1559_v59 }
 0x481   : > { %v1539_v41 = vmul.f32 %v3646_v19, %v1482_v15  ;;  %v1575_v2 = vadd.f32 %v1574_v36, %v1538_v37  ;;  %v1571_v54 = vadd.f32 %v1570_v3, %v1569_v35  ;;  %v4510_v30 = vadd.f32 %v1554_v47, %v1553_v10 }
 0x482   : > { %v1566_v27 = vrot.slane %v1565_v43, 1 }
 0x483   : > { %v1580_v20 = vrot.slane %v1539_v41, 4  ;;  %v1576_v11 = vrot.slane %v1575_v2, 2  ;;  %v1572_v34 = vrot.slane %v1571_v54, 1  ;;  %v1807_v40 = vsel %vm1030_vm0, %v4508_v52, %v4510_v30 }
 0x484   : > { %v1487_v44 = vpop.permute.xlu0 %1486  ;;  %v4514_v32 = vadd.f32 %v1566_v27, %v1565_v43 }
 0x485   : > { %v1540_v13 = vmul.f32 %v3647_v46, %v1487_v44  ;;  %v1581_v60 = vadd.f32 %v1580_v20, %v1539_v41  ;;  %v1577_v5 = vadd.f32 %v1576_v11, %v1575_v2  ;;  %v3652_v41 = vld [vmem:[%s4115_s24 + $0x58] sm:$0xff]  ;;  %v4521_v48 = vadd.f32 %v1572_v34, %v1571_v54 }
 0x486   : > { %v1808_v18 = vsel %vm1032_vm1, %v4514_v32, %v1807_v40  ;;  %v3656_v40 = vld [vmem:[%s4115_s24 + $0x70] sm:$0xff] }
 0x487   : > { %v1586_v57 = vrot.slane %v1540_v13, 4  ;;  %v1582_v22 = vrot.slane %v1581_v60, 2  ;;  %v1578_v9 = vrot.slane %v1577_v5, 1 }
 0x489   : > { %v1587_v23 = vadd.f32 %v1586_v57, %v1540_v13  ;;  %v1583_v6 = vadd.f32 %v1582_v22, %v1581_v60  ;;  %v3653_v13 = vld [vmem:[%s4115_s24 + $0x78] sm:$0xff]  ;;  %v4525_v2 = vadd.f32 %v1578_v9, %v1577_v5  ;;  %v3655_v5 = vld [vmem:[%s4115_s24 + $0x68] sm:$0xff] }
 0x48b   : > { %v1588_v26 = vrot.slane %v1587_v23, 2  ;;  %v1584_v19 = vrot.slane %v1583_v6, 1 }
 0x48d   : > { %v1502_v14 = vpop.permute.xlu1 %1501  ;;  %v1589_v1 = vadd.f32 %v1588_v26, %v1587_v23  ;;  %v4527_v60 = vadd.f32 %v1584_v19, %v1583_v6  ;;  %v3654_v23 = vld [vmem:[%s4115_s24 + $0x60] sm:$0xff]  ;;  %s4924_s24 = scalar_lea.hbm %s4977_s5, %s3091_s28 }
 0x48e   : > { %v1497_v24 = vpop.permute.xlu0 %1496  ;;  %v1543_v62 = vmul.f32 %v3648_v25, %v1502_v14 }
 0x48f   : > { %v1542_v63 = vmul.f32 %v3649_v0, %v1497_v24  ;;  %v1590_v20 = vrot.slane %v1589_v1, 1 }
 0x490   : > { %v1604_v12 = vrot.slane %v1543_v62, 4 }
 0x491   : > { %v1507_v29 = vpop.permute.xlu1 %1506  ;;  %v1598_v17 = vrot.slane %v1542_v63, 4  ;;  %v4530_v22 = vadd.f32 %v1590_v20, %v1589_v1 }
 0x492   : > { %v1544_v31 = vmul.f32 %v3650_v7, %v1507_v29  ;;  %v1492_v33 = vpop.permute.xlu0 %1491  ;;  %v1605_v45 = vadd.f32 %v1604_v12, %v1543_v62  ;;  %v1809_v62 = vsel %vm1034_vm2, %v4521_v48, %v1808_v18 }
 0x493   : > { %v1541_v28 = vmul.f32 %v3651_v58, %v1492_v33  ;;  %v1599_v36 = vadd.f32 %v1598_v17, %v1542_v63  ;;  %v1810_v26 = vsel %vm1036_vm3, %v4525_v2, %v1809_v62 }
 0x494   : > { %v1610_v15 = vrot.slane %v1544_v31, 4  ;;  %v1606_v11 = vrot.slane %v1605_v45, 2  ;;  %v1811_v6 = vsel %vm1038_vm4, %v4527_v60, %v1810_v26 }
 0x495   : > { %v1592_v37 = vrot.slane %v1541_v28, 4  ;;  %v1512_v38 = vpop.permute.xlu1 %1511  ;;  %v1600_v14 = vrot.slane %v1599_v36, 2  ;;  %v1812_v34 = vsel %vm1040_vm5, %v4530_v22, %v1811_v6 }
 0x496   : > { %v1545_v42 = vmul.f32 %v3652_v41, %v1512_v38  ;;  %v1532_v44 = vpop.permute.xlu0 %1531  ;;  %v1611_v35 = vadd.f32 %v1610_v15, %v1544_v31  ;;  %v1607_v7 = vadd.f32 %v1606_v11, %v1605_v45 }
 0x497   : > { %v1593_v46 = vadd.f32 %v1592_v37, %v1541_v28  ;;  %v1549_v39 = vmul.f32 %v3653_v13, %v1532_v44  ;;  %v1601_v31 = vadd.f32 %v1600_v14, %v1599_v36 }
 0x498   : > { %v1616_v57 = vrot.slane %v1545_v42, 4  ;;  %v1612_v24 = vrot.slane %v1611_v35, 2  ;;  %v1608_v41 = vrot.slane %v1607_v7, 1 }
 0x499   : > { %v1594_v59 = vrot.slane %v1593_v46, 2  ;;  %v1517_v10 = vpop.permute.xlu1 %1516  ;;  %v1640_v47 = vrot.slane %v1549_v39, 4 }
 0x49a   : > { %v1617_v3 = vadd.f32 %v1616_v57, %v1545_v42  ;;  %v1546_v43 = vmul.f32 %v3654_v23, %v1517_v10  ;;  %v1613_v17 = vadd.f32 %v1612_v24, %v1611_v35  ;;  %v1602_v42 = vrot.slane %v1601_v31, 1 }
 0x49b   : > { %v1595_v21 = vadd.f32 %v1594_v59, %v1593_v46  ;;  %v1641_v33 = vadd.f32 %v1640_v47, %v1549_v39  ;;  %v4546_v57 = vadd.f32 %v1608_v41, %v1607_v7 }
 0x49c   : > { %v1622_v25 = vrot.slane %v1546_v43, 4  ;;  %v1618_v63 = vrot.slane %v1617_v3, 2  ;;  %v1614_v45 = vrot.slane %v1613_v17, 1  ;;  %v4548_v18 = vadd.f32 %v1602_v42, %v1601_v31 }
 0x49d   : > { %v1596_v0 = vrot.slane %v1595_v21, 1  ;;  %v1522_v54 = vpop.permute.xlu1 %1521  ;;  %v1642_v44 = vrot.slane %v1641_v33, 2 }
 0x49e   : > { %v1623_v27 = vadd.f32 %v1622_v25, %v1546_v43  ;;  %v1547_v29 = vmul.f32 %v3655_v5, %v1522_v54  ;;  %v1619_v1 = vadd.f32 %v1618_v63, %v1617_v3  ;;  %v4550_v10 = vadd.f32 %v1614_v45, %v1613_v17 }
 0x49f   : > { %v4539_v12 = vadd.f32 %v1596_v0, %v1595_v21  ;;  %v1643_v59 = vadd.f32 %v1642_v44, %v1641_v33  ;;  %v1814_v21 = vsel %vm1030_vm0, %v4546_v57, %v4548_v18 }
 0x4a0   : > { %v1624_v58 = vrot.slane %v1623_v27, 2  ;;  %v1628_v28 = vrot.slane %v1547_v29, 4  ;;  %v1620_v13 = vrot.slane %v1619_v1, 1  ;;  %v1815_v25 = vsel %vm1032_vm1, %v4550_v10, %v1814_v21 }
 0x4a1   : > { %v1527_v15 = vpop.permute.xlu1 %1526  ;;  %v1813_v9 = vsel %vm1042_vm6, %v4539_v12, %v1812_v34  ;;  %v1644_v47 = vrot.slane %v1643_v59, 1 }
 0x4a2   : > { %v1625_v37 = vadd.f32 %v1624_v58, %v1623_v27  ;;  %v1629_v38 = vadd.f32 %v1628_v28, %v1547_v29  ;;  %v1548_v19 = vmul.f32 %v3656_v40, %v1527_v15  ;;  %3371 = vmatprep.mubr.f32.mxu1 %v1813_v9  ;;  %v4552_v43 = vadd.f32 %v1620_v13, %v1619_v1 }
 0x4a3   : > { %v4569_v26 = vadd.f32 %v1644_v47, %v1643_v59 }
 0x4a4   : > { %v1630_v36 = vrot.slane %v1629_v38, 2  ;;  %v1634_v46 = vrot.slane %v1548_v19, 4  ;;  %v1626_v39 = vrot.slane %v1625_v37, 1  ;;  %v1816_v0 = vsel %vm1034_vm2, %v4552_v43, %v1815_v25 }
 0x4a6   : > { %v1631_v20 = vadd.f32 %v1630_v36, %v1629_v38  ;;  %v1635_v35 = vadd.f32 %v1634_v46, %v1548_v19  ;;  %v4554_v11 = vadd.f32 %v1626_v39, %v1625_v37  ;;  %v4593_v36 = vld [vmem:[%s4976_s4 + $0x1] ss:$0 sm:$0xff] }
 0x4a8   : > { %v1632_v3 = vrot.slane %v1631_v20, 1  ;;  %v1636_v23 = vrot.slane %v1635_v35, 2  ;;  %v1817_v54 = vsel %vm1036_vm3, %v4554_v11, %v1816_v0 }
 0x4aa   : > { %v1637_v14 = vadd.f32 %v1636_v23, %v1635_v35  ;;  %v4559_v24 = vadd.f32 %v1632_v3, %v1631_v20 }
 0x4ac   : > { %v1638_v62 = vrot.slane %v1637_v14, 1  ;;  %v1818_v27 = vsel %vm1038_vm4, %v4559_v24, %v1817_v54 }
 0x4ae   : > { %v4565_v63 = vadd.f32 %v1638_v62, %v1637_v14 }
 0x4b0   : > { %v1819_v5 = vsel %vm1040_vm5, %v4565_v63, %v1818_v27 }
 0x4b1   : > { %v1820_v29 = vsel %vm1042_vm6, %v4569_v26, %v1819_v5 }
 0x4b2   : > { %3372 = vmatmul.mubr.f32.vlgmr.msra.gmra.mxu1 %v1820_v29 }
 0x4e2   : > { %v3317_v6 = vpop.f32.mrf.mxu0 }
 0x4e4   : > { %v1712_v7 = vpop.f32.mrf.mxu0 }
 0x4e6   : > { %v4577_v31 = vpop.f32.mrf.mxu0 }
 0x4e8   : > { %v1722_v33 = vpop.f32.mrf.mxu0 }
 0x4ea   : > { %v4579_v17 = vpop.f32.mrf.mxu0 }
 0x4ec   : > { %v1732_v58 = vpop.f32.mrf.mxu0 }
 0x4ee   : > { %v4581_v28 = vpop.f32.mrf.mxu0 }
 0x4f0   : > { %v4583_v34 = vpop.f32.mrf.mxu0 }
 0x4f2   : > { %v3329_v1 = vpop.f32.mrf.mxu0 }
 0x4f4   : > { %v1752_v41 = vpop.f32.mrf.mxu0 }
 0x4f6   : > { %v3332_v59 = vpop.f32.mrf.mxu0 }
 0x4f8   : > { %v1762_v54 = vpop.f32.mrf.mxu0 }
 0x572   : > { %v3373_v15 = vpop.f32.mrf.mxu1 }
 0x573   : > { %v1956_v9 = vrot.slane %v3373_v15, %v4159_v55  ;;  %v1949_v20 = vcombine.high %v3373_v15, %v3373_v15 }
 0x574   : > { %v1889_v37 = vpop.f32.mrf.mxu1 }
 0x575   : > { %v1964_v38 = vcombine.high %v1956_v9, %v1956_v9  ;;  %v1972_v40 = vrot.slane %v1956_v9, %v4159_v55  ;;  %v1900_v19 = vcombine.high %v1889_v37, %v1889_v37  ;;  %v1907_v42 = vrot.slane %v1889_v37, %v4159_v55 }
 0x576   : > { %v1963_v0 = vrot.slane %v1949_v20, %v4159_v55 }
 0x577   : > { %v1986_v44 = vrot.slane %v1964_v38, %v4159_v55  ;;  %v2033_v45 = vrot.slane %v1972_v40, %v4166_v4  ;;  %v1914_v46 = vrot.slane %v1900_v19, %v4159_v55  ;;  %v1915_v13 = vcombine.high %v1907_v42, %v1907_v42 }
 0x578   : > { %v1923_v39 = vrot.slane %v1907_v42, %v4159_v55  ;;  %v1994_v3 = vcombine.high %v1972_v40, %v1972_v40  ;;  %v1979_v42 = vrot.slane %v1963_v0, %v4159_v55  ;;  %v1965_v20 = vcombine.high %v1963_v0, %v1963_v0 }
 0x579   : > { %v2086_v35 = vadd.f32 %v2033_v45, %v1752_v41  ;;  %v1937_v23 = vrot.slane %v1915_v13, %v4159_v55  ;;  %v2037_v21 = vrot.slane %v1986_v44, %v4166_v4  ;;  %v1930_v25 = vrot.slane %v1914_v46, %v4159_v55 }
 0x57a   : > { %v1945_v14 = vcombine.high %v1923_v39, %v1923_v39  ;;  %v2001_v62 = vrot.slane %v1923_v39, %v4166_v4  ;;  %v2041_v27 = vrot.slane %v1994_v3, %v4166_v4  ;;  %v1916_v9 = vcombine.high %v1914_v46, %v1914_v46  ;;  %v3335_v39 = vpop.f32.mrf.mxu0 }
 0x57b   : > { %v2106_v47 = vadd.f32 %v4593_v36, %v2086_v35  ;;  %v2005_v5 = vrot.slane %v1937_v23, %v4166_v4  ;;  %v2087_v15 = vadd.f32 %v3329_v1, %v2037_v21  ;;  %v1947_v37 = vcombine.high %v1937_v23, %v1937_v23 }
 0x57c   : > { %v2009_v29 = vrot.slane %v1945_v14, %v4166_v4  ;;  %v2017_v38 = vrot.slane %v1930_v25, %v4166_v4  ;;  %v2078_v40 = vadd.f32 %v2001_v62, %v1712_v7  ;;  %v1996_v45 = vcombine.high %v1986_v44, %v1986_v44  ;;  %v1772_v21 = vpop.f32.mrf.mxu0 }
 0x57d   : > { %3545 = vtanh.f32 %v2106_v47  ;;  %v2079_v19 = vadd.f32 %v3317_v6, %v2005_v5  ;;  %v2088_v13 = vadd.f32 %v2041_v27, %v1762_v54  ;;  %v2107_v35 = vadd.f32 %v4593_v36, %v2087_v15  ;;  %v4624_v5 = vld [vmem:[%s4976_s4 + $0x3] ss:$0 sm:$0xff] }
 0x57e   : > { %v2080_v41 = vadd.f32 %v2009_v29, %v1722_v33  ;;  %v2098_v3 = vadd.f32 %v4593_v36, %v2078_v40  ;;  %v1944_v1 = vrot.slane %v1916_v9, %v4159_v55  ;;  %v2013_v46 = vrot.slane %v1947_v37, %v4166_v4 }
 0x57f   : > { %v2099_v14 = vadd.f32 %v4593_v36, %v2079_v19  ;;  %v2082_v23 = vadd.f32 %v2017_v38, %v1732_v58  ;;  %v2049_v7 = vrot.slane %v1979_v42, %v4166_v4  ;;  %v2045_v33 = vrot.slane %v1996_v45, %v4166_v4 }
 0x580   : > { %v2100_v6 = vadd.f32 %v4593_v36, %v2080_v41  ;;  %3547 = vtanh.f32 %v2098_v3  ;;  %v2108_v44 = vadd.f32 %v4593_v36, %v2088_v13  ;;  %v1946_v47 = vcombine.high %v1930_v25, %v1930_v25  ;;  %v3338_v41 = vpop.f32.mrf.mxu0 }
 0x581   : > { %3549 = vtanh.f32 %v2099_v14  ;;  %v1993_v62 = vrot.slane %v1965_v20, %v4159_v55  ;;  %v2090_v0 = vadd.f32 %v2049_v7, %v1772_v21  ;;  %v2021_v54 = vrot.slane %v1944_v1, %v4166_v4 }
 0x582   : > { %3551 = vtanh.f32 %v2107_v35  ;;  %v2081_v58 = vadd.f32 %v4577_v31, %v2013_v46  ;;  %v2102_v27 = vadd.f32 %v4593_v36, %v2082_v23  ;;  %v2089_v15 = vadd.f32 %v3332_v59, %v2045_v33 }
 0x583   : > { %3553 = vtanh.f32 %v2100_v6  ;;  %v1948_v9 = vcombine.high %v1944_v1, %v1944_v1  ;;  %v2053_v25 = vrot.slane %v1993_v62, %v4166_v4  ;;  %v2110_v55 = vadd.f32 %v4593_v36, %v2090_v0 }
 0x584   : > { %3555 = vtanh.f32 %v2108_v44  ;;  %v1995_v37 = vcombine.high %v1979_v42, %v1979_v42  ;;  %v2025_v31 = vrot.slane %v1946_v47, %v4166_v4  ;;  %v2083_v40 = vadd.f32 %v4579_v17, %v2021_v54  ;;  %v1782_v17 = vpop.f32.mrf.mxu0 }
 0x585   : > { %v2101_v19 = vadd.f32 %v4593_v36, %v2081_v58  ;;  %3557 = vtanh.f32 %v2102_v27  ;;  %v2109_v59 = vadd.f32 %v4593_v36, %v2089_v15  ;;  %v2091_v45 = vadd.f32 %v3335_v39, %v2053_v25 }
 0x586   : > { %3559 = vtanh.f32 %v2110_v55  ;;  %v1997_v13 = vcombine.high %v1993_v62, %v1993_v62  ;;  %v2057_v20 = vrot.slane %v1995_v37, %v4166_v4  ;;  %v2029_v42 = vrot.slane %v1948_v9, %v4166_v4 }
 0x587   : > { %v2084_v35 = vadd.f32 %v2025_v31, %v4583_v34  ;;  %v2103_v3 = vadd.f32 %v4593_v36, %v2083_v40  ;;  %3561 = vtanh.f32 %v2101_v19  ;;  %v2111_v46 = vadd.f32 %v4593_v36, %v2091_v45 }
 0x588   : > { %3563 = vtanh.f32 %v2109_v59  ;;  %v2061_v23 = vrot.slane %v1997_v13, %v4166_v4  ;;  %v2092_v39 = vadd.f32 %v2057_v20, %v1782_v17  ;;  %v2085_v33 = vadd.f32 %v4581_v28, %v2029_v42 }
 0x589   : > { %v2104_v44 = vadd.f32 %v4593_v36, %v2084_v35  ;;  %3565 = vtanh.f32 %v2103_v3 }
 0x58a   : > { %v3546_v29 = vpop.eup %3545  ;;  %3567 = vtanh.f32 %v2111_v46  ;;  %v2093_v62 = vadd.f32 %v3338_v41, %v2061_v23  ;;  %v2112_v0 = vadd.f32 %v4593_v36, %v2092_v39  ;;  %v2105_v58 = vadd.f32 %v4593_v36, %v2085_v33 }
 0x58b   : > { %v2142_v38 = vmul.f32 %v3546_v29, %v4624_v5  ;;  %3569 = vtanh.f32 %v2104_v44 }
 0x58c   : > { %v2113_v29 = vadd.f32 %v4593_v36, %v2093_v62  ;;  %3571 = vtanh.f32 %v2112_v0 }
 0x58d   : > { %2166 = vadd.xlane.f32.xlu0 %v2142_v38  ;;  %v3548_v14 = vpop.eup %3547  ;;  %3573 = vtanh.f32 %v2105_v58 }
 0x58e   : > { %v3550_v1 = vpop.eup %3549  ;;  %v2134_v6 = vmul.f32 %v3548_v14, %v4624_v5  ;;  %3575 = vtanh.f32 %v2113_v29 }
 0x58f   : > { %v3552_v7 = vpop.eup %3551  ;;  %v2135_v34 = vmul.f32 %v3550_v1, %v4624_v5 }
 0x590   : > { %v3554_v21 = vpop.eup %3553  ;;  %2150 = vadd.xlane.f32.xlu1 %v2134_v6  ;;  %v2143_v54 = vmul.f32 %v3552_v7, %v4624_v5 }
 0x591   : > { %2152 = vadd.xlane.f32.xlu0 %v2135_v34  ;;  %v3556_v47 = vpop.eup %3555  ;;  %v2136_v28 = vmul.f32 %v3554_v21, %v4624_v5 }
 0x592   : > { %v3558_v27 = vpop.eup %3557  ;;  %v2144_v15 = vmul.f32 %v3556_v47, %v4624_v5 }
 0x593   : > { %v3560_v9 = vpop.eup %3559  ;;  %v2138_v25 = vmul.f32 %v3558_v27, %v4624_v5 }
 0x594   : > { %2168 = vadd.xlane.f32.xlu1 %v2143_v54  ;;  %v3562_v55 = vpop.eup %3561  ;;  %v2146_v38 = vmul.f32 %v3560_v9, %v4624_v5 }
 0x595   : > { %2154 = vadd.xlane.f32.xlu0 %v2136_v28  ;;  %v3564_v37 = vpop.eup %3563  ;;  %v2137_v31 = vmul.f32 %v3562_v55, %v4624_v5 }
 0x596   : > { %v3566_v40 = vpop.eup %3565  ;;  %v2145_v36 = vmul.f32 %v3564_v37, %v4624_v5 }
 0x597   : > { %v3568_v19 = vpop.eup %3567  ;;  %v2139_v41 = vmul.f32 %v3566_v40, %v4624_v5 }
 0x598   : > { %2170 = vadd.xlane.f32.xlu1 %v2144_v15  ;;  %v3570_v59 = vpop.eup %3569  ;;  %v2147_v45 = vmul.f32 %v3568_v19, %v4624_v5 }
 0x599   : > { %2158 = vadd.xlane.f32.xlu0 %v2138_v25  ;;  %v3572_v13 = vpop.eup %3571  ;;  %v2140_v20 = vmul.f32 %v3570_v59, %v4624_v5 }
 0x59a   : > { %v3574_v42 = vpop.eup %3573  ;;  %v2148_v35 = vmul.f32 %v3572_v13, %v4624_v5 }
 0x59b   : > { %v3576_v3 = vpop.eup %3575  ;;  %v2141_v17 = vmul.f32 %v3574_v42, %v4624_v5 }
 0x59c   : > { %2174 = vadd.xlane.f32.xlu1 %v2146_v38  ;;  %v2149_v14 = vmul.f32 %v3576_v3, %v4624_v5 }
 0x59d   : > { %2156 = vadd.xlane.f32.xlu0 %v2137_v31 }
 0x5a0   : > { %2172 = vadd.xlane.f32.xlu1 %v2145_v36 }
 0x5a1   : > { %2160 = vadd.xlane.f32.xlu0 %v2139_v41 }
 0x5a4   : > { %2176 = vadd.xlane.f32.xlu1 %v2147_v45 }
 0x5a5   : > { %2162 = vadd.xlane.f32.xlu0 %v2140_v20 }
 0x5a8   : > { %2178 = vadd.xlane.f32.xlu1 %v2148_v35 }
 0x5a9   : > { %2164 = vadd.xlane.f32.xlu0 %v2141_v17 }
 0x5ac   : > { %2180 = vadd.xlane.f32.xlu1 %v2149_v14 }
 0x616   : > { %v2167_v1 = vpop.xlane.xlu0 %2166 }
 0x617   : > { %v2233_v15 = vrot.slane %v2167_v1, %v4258_v8 }
 0x619   : > { %v4659_v46 = vpop.xlane.xlu1 %2150 }
 0x61a   : > { %v2153_v23 = vpop.xlane.xlu0 %2152  ;;  %v2201_v0 = vrot.slane %v4659_v46, %v4258_v8 }
 0x61b   : > { %v2205_v21 = vrot.slane %v2153_v23, %v4258_v8 }
 0x61d   : > { %v2169_v39 = vpop.xlane.xlu1 %2168  ;;  %v2262_v28 = vsel %vm1030_vm0, %v2205_v21, %v2201_v0 }
 0x61e   : > { %v2155_v6 = vpop.xlane.xlu0 %2154  ;;  %v2237_v58 = vrot.slane %v2169_v39, %v4258_v8 }
 0x61f   : > { %v2209_v62 = vrot.slane %v2155_v6, %v4258_v8 }
 0x620   : > { %v2269_v31 = vsel %vm1030_vm0, %v2237_v58, %v2233_v15 }
 0x621   : > { %v2171_v7 = vpop.xlane.xlu1 %2170  ;;  %v2263_v9 = vsel %vm1032_vm1, %v2209_v62, %v2262_v28 }
 0x622   : > { %v4661_v33 = vpop.xlane.xlu0 %2158  ;;  %v2241_v27 = vrot.slane %v2171_v7, %v4258_v8 }
 0x623   : > { %v2217_v40 = vrot.slane %v4661_v33, %v4258_v8 }
 0x624   : > { %v2270_v19 = vsel %vm1032_vm1, %v2241_v27, %v2269_v31 }
 0x625   : > { %v4663_v44 = vpop.xlane.xlu1 %2174 }
 0x626   : > { %v4665_v34 = vpop.xlane.xlu0 %2156  ;;  %v2249_v42 = vrot.slane %v4663_v44, %v4258_v8 }
 0x627   : > { %v2213_v54 = vrot.slane %v4665_v34, %v4258_v8 }
 0x629   : > { %v2173_v47 = vpop.xlane.xlu1 %2172  ;;  %v2264_v37 = vsel %vm1034_vm2, %v2213_v54, %v2263_v9 }
 0x62a   : > { %v4669_v5 = vpop.xlane.xlu0 %2160  ;;  %v2245_v25 = vrot.slane %v2173_v47, %v4258_v8  ;;  %v2265_v20 = vsel %vm1036_vm3, %v2217_v40, %v2264_v37 }
 0x62b   : > { %v2221_v38 = vrot.slane %v4669_v5, %v4258_v8 }
 0x62c   : > { %v2271_v59 = vsel %vm1034_vm2, %v2245_v25, %v2270_v19 }
 0x62d   : > { %v4678_v29 = vpop.xlane.xlu1 %2176  ;;  %v2266_v17 = vsel %vm1038_vm4, %v2221_v38, %v2265_v20  ;;  %v2272_v0 = vsel %vm1036_vm3, %v2249_v42, %v2271_v59 }
 0x62e   : > { %v4683_v55 = vpop.xlane.xlu0 %2162  ;;  %v2253_v45 = vrot.slane %v4678_v29, %v4258_v8 }
 0x62f   : > { %v2225_v36 = vrot.slane %v4683_v55, %v4258_v8 }
 0x630   : > { %v2273_v28 = vsel %vm1038_vm4, %v2253_v45, %v2272_v0 }
 0x631   : > { %v4694_v41 = vpop.xlane.xlu1 %2178  ;;  %v2267_v14 = vsel %vm1040_vm5, %v2225_v36, %v2266_v17 }
 0x632   : > { %v4699_v13 = vpop.xlane.xlu0 %2164  ;;  %v2257_v35 = vrot.slane %v4694_v41, %v4258_v8 }
 0x633   : > { %v2229_v3 = vrot.slane %v4699_v13, %v4258_v8 }
 0x634   : > { %v2274_v27 = vsel %vm1040_vm5, %v2257_v35, %v2273_v28 }
 0x635   : > { %v4710_v21 = vpop.xlane.xlu1 %2180  ;;  %v2268_v62 = vsel %vm1042_vm6, %v2229_v3, %v2267_v14 }
 0x636   : > { %v2261_v54 = vrot.slane %v4710_v21, %v4258_v8  ;;  %v2278_v58 = vsel %vm1053_vm7, %v2268_v62, -inf }
 0x637   : > { %2279 = vmax.xlane.f32.xlu0 %v2278_v58 }
 0x638   : > { %v2275_v15 = vsel %vm1042_vm6, %v2261_v54, %v2274_v27 }
 0x639   : > { %v2281_v9 = vsel %vm1053_vm7, %v2275_v15, -inf }
 0x63a   : > { %2282 = vmax.xlane.f32.xlu1 %v2281_v9 }
 0x6c0   : > { %v2280_v37 = vpop.xlane.xlu0 %2279 }
 0x6c1   : > { %v2293_v40 = vrot.slane %v2280_v37, %v4321_v49  ;;  %v2297_v45 = vrot.slane %v2280_v37, %v4324_v50  ;;  %v2301_v14 = vrot.slane %v2280_v37, %v4330_v53  ;;  %v2309_v15 = vrot.slane %v2280_v37, %v4327_v51 }
 0x6c3   : > { %v4721_v25 = vpop.xlane.xlu1 %2282  ;;  %v2367_v20 = vsub.f32 %v2153_v23, %v2293_v40  ;;  %v2368_v62 = vsub.f32 %v2155_v6, %v2297_v45  ;;  %v2369_v23 = vsub.f32 %v4665_v34, %v2301_v14  ;;  %v2313_v40 = vrot.slane %v2280_v37, %v4333_v56 }
 0x6c4   : > { %v2321_v38 = vrot.slane %v4721_v25, %v4166_v4  ;;  %v2325_v31 = vrot.slane %v4721_v25, %v4321_v49  ;;  %v2329_v36 = vrot.slane %v4721_v25, %v4324_v50  ;;  %v2333_v42 = vrot.slane %v4721_v25, %v4330_v53 }
 0x6c5   : > { %v2384_v0 = vmul.f32 1.442695, %v2367_v20  ;;  %v2337_v54 = vrot.slane %v4721_v25, %v4339_v61  ;;  %v2386_v28 = vmul.f32 1.442695, %v2368_v62 }
 0x6c6   : > { %v2374_v19 = vsub.f32 %v2167_v1, %v2321_v38  ;;  %v2375_v59 = vsub.f32 %v2169_v39, %v2325_v31  ;;  %v2376_v35 = vsub.f32 %v2171_v7, %v2329_v36  ;;  %v2377_v58 = vsub.f32 %v2173_v47, %v2333_v42 }
 0x6c7   : > { %v2305_v39 = vrot.slane %v2280_v37, %v4339_v61  ;;  %v2341_v7 = vrot.slane %v4721_v25, %v4327_v51  ;;  %v2378_v27 = vsub.f32 %v4663_v44, %v2337_v54  ;;  %v2388_v47 = vmul.f32 1.442695, %v2369_v23 }
 0x6c8   : > { %v2398_v3 = vmul.f32 1.442695, %v2374_v19  ;;  %v2400_v17 = vmul.f32 1.442695, %v2375_v59  ;;  %v2402_v1 = vmul.f32 1.442695, %v2376_v35  ;;  %v2289_v38 = vrot.slane %v2280_v37, %v4166_v4 }
 0x6c9   : > { %v2404_v6 = vmul.f32 1.442695, %v2377_v58  ;;  %v2370_v9 = vsub.f32 %v4661_v33, %v2305_v39  ;;  %v2379_v31 = vsub.f32 %v4678_v29, %v2341_v7  ;;  %v2406_v34 = vmul.f32 1.442695, %v2378_v27 }
 0x6ca   : > { %3577 = vpow2.f32 %v2398_v3  ;;  %v2371_v36 = vsub.f32 %v4669_v5, %v2309_v15  ;;  %v2366_v59 = vsub.f32 %v4659_v46, %v2289_v38  ;;  %v2345_v33 = vrot.slane %v4721_v25, %v4333_v56 }
 0x6cb   : > { %3579 = vpow2.f32 %v2400_v17  ;;  %v2390_v44 = vmul.f32 1.442695, %v2370_v9  ;;  %v2408_v45 = vmul.f32 1.442695, %v2379_v31  ;;  %v2317_v29 = vrot.slane %v2280_v37, %v4347_v16 }
 0x6cc   : > { %3581 = vpow2.f32 %v2384_v0  ;;  %v2372_v5 = vsub.f32 %v4683_v55, %v2313_v40  ;;  %v2392_v42 = vmul.f32 1.442695, %v2371_v36  ;;  %v2382_v46 = vmul.f32 1.442695, %v2366_v59 }
 0x6cd   : > { %3583 = vpow2.f32 %v2402_v1  ;;  %v2349_v3 = vrot.slane %v4721_v25, %v4347_v16  ;;  %v2380_v17 = vsub.f32 %v4694_v41, %v2345_v33  ;;  %v2373_v37 = vsub.f32 %v4699_v13, %v2317_v29 }
 0x6ce   : > { %3585 = vpow2.f32 %v2386_v28  ;;  %v2394_v55 = vmul.f32 1.442695, %v2372_v5 }
 0x6cf   : > { %3587 = vpow2.f32 %v2404_v6  ;;  %v2381_v0 = vsub.f32 %v4710_v21, %v2349_v3  ;;  %v2410_v54 = vmul.f32 1.442695, %v2380_v17  ;;  %v2396_v41 = vmul.f32 1.442695, %v2373_v37 }
 0x6d0   : > { %3589 = vpow2.f32 %v2388_v47 }
 0x6d1   : > { %3591 = vpow2.f32 %v2406_v34  ;;  %v2412_v13 = vmul.f32 1.442695, %v2381_v0 }
 0x6d2   : > { %3593 = vpow2.f32 %v2390_v44 }
 0x6d3   : > { %3595 = vpow2.f32 %v2408_v45 }
 0x6d4   : > { %3597 = vpow2.f32 %v2392_v42 }
 0x6d5   : > { %3599 = vpow2.f32 %v2382_v46 }
 0x6d6   : > { %3601 = vpow2.f32 %v2394_v55 }
 0x6d7   : > { %v4747_v19 = vpop.eup %3577  ;;  %3603 = vpow2.f32 %v2410_v54 }
 0x6d8   : > { %v4752_v20 = vpop.eup %3579  ;;  %2455 = vperm.xlu1 %3448, %v4747_v19   ;;  %3605 = vpow2.f32 %v2396_v41 }
 0x6d9   : > { %2458 = vperm.xlu0 %3447, %v4752_v20   ;;  %v4758_v35 = vpop.eup %3581  ;;  %3607 = vpow2.f32 %v2412_v13 }
 0x6da   : > { %v4763_v14 = vpop.eup %3583 }
 0x6db   : > { %v4768_v62 = vpop.eup %3585 }
 0x6dc   : > { %2434 = vperm.xlu1 %3448, %v4758_v35   ;;  %v4771_v25 = vpop.eup %3587 }
 0x6dd   : > { %2461 = vperm.xlu0 %3447, %v4763_v14   ;;  %v4775_v58 = vpop.eup %3589 }
 0x6de   : > { %v4777_v1 = vpop.eup %3591 }
 0x6df   : > { %v4781_v21 = vpop.eup %3593 }
 0x6e0   : > { %2437 = vperm.xlu1 %3448, %v4768_v62   ;;  %v4783_v39 = vpop.eup %3595 }
 0x6e1   : > { %2464 = vperm.xlu0 %3447, %v4771_v25   ;;  %v4787_v23 = vpop.eup %3597 }
 0x6e2   : > { %v4789_v28 = vpop.eup %3599 }
 0x6e3   : > { %v4793_v7 = vpop.eup %3601 }
 0x6e4   : > { %2440 = vperm.xlu1 %3448, %v4775_v58   ;;  %v4795_v27 = vpop.eup %3603 }
 0x6e5   : > { %2467 = vperm.xlu0 %3447, %v4777_v1   ;;  %v4799_v6 = vpop.eup %3605 }
 0x6e6   : > { %v4801_v15 = vpop.eup %3607 }
 0x6e8   : > { %2443 = vperm.xlu1 %3448, %v4781_v21  }
 0x6e9   : > { %2470 = vperm.xlu0 %3447, %v4783_v39  }
 0x6ec   : > { %2446 = vperm.xlu1 %3448, %v4787_v23  }
 0x6ed   : > { %2431 = vperm.xlu0 %3447, %v4789_v28  }
 0x6f0   : > { %2449 = vperm.xlu1 %3448, %v4793_v7  }
 0x6f1   : > { %2473 = vperm.xlu0 %3447, %v4795_v27  }
 0x6f4   : > { %2452 = vperm.xlu1 %3448, %v4799_v6  }
 0x6f5   : > { %2476 = vperm.xlu0 %3447, %v4801_v15  }
 0x753   : > { %v2456_v9 = vpop.permute.xlu1 %2455 }
 0x754   : > { %v2459_v47 = vpop.permute.xlu0 %2458  ;;  %v2513_v29 = vrot.slane %v2456_v9, %v4258_v8 }
 0x755   : > { %v2517_v5 = vrot.slane %v2459_v47, %v4258_v8 }
 0x757   : > { %v2435_v38 = vpop.permute.xlu1 %2434  ;;  %v2549_v13 = vsel %vm1030_vm0, %v2517_v5, %v2513_v29 }
 0x758   : > { %v2462_v31 = vpop.permute.xlu0 %2461  ;;  %v2485_v46 = vrot.slane %v2435_v38, %v4258_v8 }
 0x759   : > { %v2521_v17 = vrot.slane %v2462_v31, %v4258_v8 }
 0x75b   : > { %v2438_v34 = vpop.permute.xlu1 %2437 }
 0x75c   : > { %v2465_v40 = vpop.permute.xlu0 %2464  ;;  %v2489_v37 = vrot.slane %v2438_v34, %v4258_v8 }
 0x75d   : > { %v2525_v55 = vrot.slane %v2465_v40, %v4258_v8 }
 0x75f   : > { %v2441_v36 = vpop.permute.xlu1 %2440 }
 0x760   : > { %v2468_v44 = vpop.permute.xlu0 %2467  ;;  %v2493_v0 = vrot.slane %v2441_v36, %v4258_v8 }
 0x761   : > { %v2529_v9 = vrot.slane %v2468_v44, %v4258_v8 }
 0x763   : > { %v2444_v59 = vpop.permute.xlu1 %2443 }
 0x764   : > { %v2471_v33 = vpop.permute.xlu0 %2470  ;;  %v2497_v47 = vrot.slane %v2444_v59, %v4258_v8 }
 0x765   : > { %v2533_v31 = vrot.slane %v2471_v33, %v4258_v8 }
 0x767   : > { %v2447_v45 = vpop.permute.xlu1 %2446 }
 0x768   : > { %v2432_v42 = vpop.permute.xlu0 %2431  ;;  %v2501_v34 = vrot.slane %v2447_v45, %v4258_v8 }
 0x769   : > { %v2481_v3 = vrot.slane %v2432_v42, %v4258_v8 }
 0x76b   : > { %v2542_v54 = vsel %vm1030_vm0, %v2485_v46, %v2481_v3  ;;  %v2450_v41 = vpop.permute.xlu1 %2449  ;;  %v2550_v46 = vsel %vm1032_vm1, %v2521_v17, %v2549_v13 }
 0x76c   : > { %v2543_v38 = vsel %vm1032_vm1, %v2489_v37, %v2542_v54  ;;  %v2474_v42 = vpop.permute.xlu0 %2473  ;;  %v2505_v36 = vrot.slane %v2450_v41, %v4258_v8  ;;  %v2551_v44 = vsel %vm1034_vm2, %v2525_v55, %v2550_v46 }
 0x76d   : > { %v2544_v40 = vsel %vm1034_vm2, %v2493_v0, %v2543_v38  ;;  %v2537_v3 = vrot.slane %v2474_v42, %v4258_v8  ;;  %v2552_v37 = vsel %vm1036_vm3, %v2529_v9, %v2551_v44 }
 0x76e   : > { %v2545_v29 = vsel %vm1036_vm3, %v2497_v47, %v2544_v40  ;;  %v2553_v0 = vsel %vm1038_vm4, %v2533_v31, %v2552_v37 }
 0x76f   : > { %v2453_v59 = vpop.permute.xlu1 %2452  ;;  %v2546_v5 = vsel %vm1038_vm4, %v2501_v34, %v2545_v29  ;;  %v2554_v13 = vsel %vm1040_vm5, %v2537_v3, %v2553_v0 }
 0x770   : > { %v2509_v33 = vrot.slane %v2453_v59, %v4258_v8  ;;  %v2477_v45 = vpop.permute.xlu0 %2476  ;;  %v2547_v17 = vsel %vm1040_vm5, %v2505_v36, %v2546_v5 }
 0x771   : > { %v2541_v54 = vrot.slane %v2477_v45, %v4258_v8 }
 0x772   : > { %v2548_v41 = vsel %vm1042_vm6, %v2509_v33, %v2547_v17 }
 0x773   : > { %v2558_v55 = vsel %vm1053_vm7, %v2548_v41, 0.0  ;;  %v2555_v47 = vsel %vm1042_vm6, %v2541_v54, %v2554_v13 }
 0x774   : > { %2559 = vadd.xlane.f32.xlu1 %v2558_v55  ;;  %v2561_v9 = vsel %vm1053_vm7, %v2555_v47, 0.0 }
 0x775   : > { %2562 = vadd.xlane.f32.xlu0 %v2561_v9 }
 0x7fd   : > { %v2560_v42 = vpop.xlane.xlu1 %2559 }
 0x7fe   : > { %v2563_v38 = vpop.xlane.xlu0 %2562  ;;  %v2573_v40 = vrot.slane %v2560_v42, %v4321_v49  ;;  %v2577_v46 = vrot.slane %v2560_v42, %v4324_v50  ;;  %v2581_v29 = vrot.slane %v2560_v42, %v4330_v53  ;;  %v2585_v59 = vrot.slane %v2560_v42, %v4339_v61 }
 0x7ff   : > { %v2605_v31 = vrot.slane %v2563_v38, %v4321_v49  ;;  %v2601_v8 = vrot.slane %v2563_v38, %v4166_v4  ;;  %v2609_v34 = vrot.slane %v2563_v38, %v4324_v50  ;;  %v2613_v36 = vrot.slane %v2563_v38, %v4330_v53 }
 0x800   : > { %v2617_v3 = vrot.slane %v2563_v38, %v4339_v61  ;;  %v2621_v44 = vrot.slane %v2563_v38, %v4327_v51  ;;  %v2569_v50 = vrot.slane %v2560_v42, %v4166_v4  ;;  %v2589_v45 = vrot.slane %v2560_v42, %v4327_v51 }
 0x801   : > { %3609 = vrcp.f32 %v2605_v31  ;;  %v2625_v61 = vrot.slane %v2563_v38, %v4333_v56 }
 0x802   : > { %3611 = vrcp.f32 %v2601_v8 }
 0x803   : > { %3613 = vrcp.f32 %v2609_v34 }
 0x804   : > { %3615 = vrcp.f32 %v2573_v40 }
 0x805   : > { %3617 = vrcp.f32 %v2613_v36 }
 0x806   : > { %3619 = vrcp.f32 %v2577_v46  ;;  %v3657_v46 = vld [vmem:[%s4122_s17 + $0x48] sm:$0xff] }
 0x807   : > { %3621 = vrcp.f32 %v2617_v3 }
 0x808   : > { %3623 = vrcp.f32 %v2581_v29 }
 0x809   : > { %3625 = vrcp.f32 %v2621_v44  ;;  %v3658_v44 = vld [vmem:[%s4122_s17 + $0x40] sm:$0xff] }
 0x80a   : > { %3627 = vrcp.f32 %v2585_v59 }
 0x80b   : > { %3629 = vrcp.f32 %v2569_v50 }
 0x80c   : > { %3631 = vrcp.f32 %v2589_v45 }
 0x80d   : > { %3633 = vrcp.f32 %v2625_v61 }
 0x80e   : > { %v3610_v49 = vpop.eup %3609 }
 0x80f   : > { %v3612_v5 = vpop.eup %3611  ;;  %v2665_v37 = vmul.f32 %v3610_v49, %v4752_v20  ;;  %v2593_v20 = vrot.slane %v2560_v42, %v4333_v56 }
 0x810   : > { %v3614_v33 = vpop.eup %3613  ;;  %v2663_v53 = vmul.f32 %v3612_v5, %v4747_v19  ;;  %v2629_v19 = vrot.slane %v2563_v38, %v4347_v16 }
 0x811   : > { %v3616_v0 = vpop.eup %3615  ;;  %2725 = vperm.xlu0 %3447, %v2665_v37   ;;  %v2667_v54 = vmul.f32 %v3614_v33, %v4763_v14  ;;  %v2597_v14 = vrot.slane %v2560_v42, %v4347_v16  ;;  %3635 = vrcp.f32 %v2593_v20  ;;  %v3659_v37 = vld [vmem:[%s4122_s17 + $0x50] sm:$0xff] }
 0x812   : > { %2720 = vperm.xlu1 %3448, %v2663_v53   ;;  %v3618_v17 = vpop.eup %3617  ;;  %v2649_v4 = vmul.f32 %v3616_v0, %v4758_v35  ;;  %3637 = vrcp.f32 %v2629_v19 }
 0x813   : > { %v3620_v41 = vpop.eup %3619  ;;  %v2669_v51 = vmul.f32 %v3618_v17, %v4771_v25  ;;  %3639 = vrcp.f32 %v2597_v14 }
 0x814   : > { %v3622_v13 = vpop.eup %3621  ;;  %v2651_v55 = vmul.f32 %v3620_v41, %v4768_v62  ;;  %v3661_v41 = vld [vmem:[%s4122_s17 + $0x58] sm:$0xff] }
 0x815   : > { %2730 = vperm.xlu0 %3447, %v2667_v54   ;;  %v3624_v47 = vpop.eup %3623  ;;  %v2671_v56 = vmul.f32 %v3622_v13, %v4777_v1 }
 0x816   : > { %2685 = vperm.xlu1 %3448, %v2649_v4   ;;  %v3626_v35 = vpop.eup %3625  ;;  %v2653_v9 = vmul.f32 %v3624_v47, %v4775_v58 }
 0x817   : > { %v3628_v25 = vpop.eup %3627  ;;  %v2673_v38 = vmul.f32 %v3626_v35, %v4783_v39 }
 0x818   : > { %v3630_v31 = vpop.eup %3629  ;;  %v2655_v16 = vmul.f32 %v3628_v25, %v4781_v21 }
 0x819   : > { %2735 = vperm.xlu0 %3447, %v2669_v51   ;;  %v3632_v42 = vpop.eup %3631  ;;  %v2647_v62 = vmul.f32 %v3630_v31, %v4789_v28 }
 0x81a   : > { %2690 = vperm.xlu1 %3448, %v2651_v55   ;;  %v3634_v8 = vpop.eup %3633  ;;  %v2657_v1 = vmul.f32 %v3632_v42, %v4787_v23  ;;  %v3662_v55 = vld [vmem:[%s4122_s17 + $0x10] sm:$0xff] }
 0x81b   : > { %v2675_v58 = vmul.f32 %v3634_v8, %v4795_v27  ;;  %v3663_v8 = vld [vmem:[%s4122_s17 + $0x60] sm:$0xff] }
 0x81d   : > { %2740 = vperm.xlu0 %3447, %v2671_v56  }
 0x81e   : > { %2695 = vperm.xlu1 %3448, %v2653_v9   ;;  %v3636_v34 = vpop.eup %3635 }
 0x81f   : > { %v3638_v40 = vpop.eup %3637  ;;  %v2659_v39 = vmul.f32 %v3636_v34, %v4793_v7 }
 0x820   : > { %v3640_v36 = vpop.eup %3639  ;;  %v2677_v21 = vmul.f32 %v3638_v40, %v4801_v15  ;;  %v3664_v40 = vld [vmem:[%s4122_s17 + $0x18] sm:$0xff] }
 0x821   : > { %2745 = vperm.xlu0 %3447, %v2673_v38   ;;  %v2661_v28 = vmul.f32 %v3640_v36, %v4799_v6  ;;  %v3660_v6 = vld [vmem:[%s4122_s17 + $0x8] sm:$0xff] }
 0x822   : > { %2700 = vperm.xlu1 %3448, %v2655_v16  }
 0x825   : > { %2680 = vperm.xlu0 %3447, %v2647_v62  }
 0x826   : > { %2705 = vperm.xlu1 %3448, %v2657_v1  }
 0x829   : > { %2750 = vperm.xlu0 %3447, %v2675_v58  }
 0x82a   : > { %2710 = vperm.xlu1 %3448, %v2659_v39  }
 0x82d   : > { %2755 = vperm.xlu0 %3447, %v2677_v21  }
 0x82e   : > { %2715 = vperm.xlu1 %3448, %v2661_v28  }
 0x88c   : > { %v2726_v23 = vpop.permute.xlu0 %2725 }
 0x88d   : > { %v2767_v3 = vmul.f32 %v3657_v46, %v2726_v23  ;;  %v2721_v29 = vpop.permute.xlu1 %2720 }
 0x88e   : > { %v2766_v27 = vmul.f32 %v3658_v44, %v2721_v29 }
 0x88f   : > { %v2828_v59 = vrot.slane %v2767_v3, 4 }
 0x890   : > { %v2822_v49 = vrot.slane %v2766_v27, 4  ;;  %v2731_v7 = vpop.permute.xlu0 %2730 }
 0x891   : > { %v2829_v5 = vadd.f32 %v2828_v59, %v2767_v3  ;;  %v2768_v50 = vmul.f32 %v3659_v37, %v2731_v7  ;;  %v2686_v33 = vpop.permute.xlu1 %2685  ;;  %v3665_v7 = vld [vmem:[%s4122_s17 + $0x68] sm:$0xff] }
 0x892   : > { %v2823_v15 = vadd.f32 %v2822_v49, %v2766_v27  ;;  %v2759_v45 = vmul.f32 %v3660_v6, %v2686_v33 }
 0x893   : > { %v2830_v53 = vrot.slane %v2829_v5, 2  ;;  %v2834_v0 = vrot.slane %v2768_v50, 4 }
 0x894   : > { %v2824_v54 = vrot.slane %v2823_v15, 2  ;;  %v2780_v61 = vrot.slane %v2759_v45, 4  ;;  %v2736_v17 = vpop.permute.xlu0 %2735 }
 0x895   : > { %v2831_v20 = vadd.f32 %v2830_v53, %v2829_v5  ;;  %v2835_v4 = vadd.f32 %v2834_v0, %v2768_v50  ;;  %v2769_v51 = vmul.f32 %v3661_v41, %v2736_v17  ;;  %v2691_v19 = vpop.permute.xlu1 %2690  ;;  %v3666_v0 = vld [vmem:[%s4122_s17 + $0x20] sm:$0xff] }
 0x896   : > { %v2825_v13 = vadd.f32 %v2824_v54, %v2823_v15  ;;  %v2781_v14 = vadd.f32 %v2780_v61, %v2759_v45  ;;  %v2760_v47 = vmul.f32 %v3662_v55, %v2691_v19 }
 0x897   : > { %v2836_v56 = vrot.slane %v2835_v4, 2  ;;  %v2840_v35 = vrot.slane %v2769_v51, 4  ;;  %v2832_v9 = vrot.slane %v2831_v20, 1 }
 0x898   : > { %v2826_v25 = vrot.slane %v2825_v13, 1  ;;  %v2782_v38 = vrot.slane %v2781_v14, 2  ;;  %v2786_v31 = vrot.slane %v2760_v47, 4  ;;  %v2741_v16 = vpop.permute.xlu0 %2740 }
 0x899   : > { %v2837_v42 = vadd.f32 %v2836_v56, %v2835_v4  ;;  %v2841_v62 = vadd.f32 %v2840_v35, %v2769_v51  ;;  %v2770_v1 = vmul.f32 %v3663_v8, %v2741_v16  ;;  %v2696_v34 = vpop.permute.xlu1 %2695  ;;  %v2833_v23 = vadd.f32 %v2832_v9, %v2831_v20  ;;  %v3668_v35 = vld [vmem:[%s4122_s17 + $0x28] sm:$0xff] }
 0x89a   : > { %v2787_v58 = vadd.f32 %v2786_v31, %v2760_v47  ;;  %v2761_v39 = vmul.f32 %v3664_v40, %v2696_v34  ;;  %v2783_v36 = vadd.f32 %v2782_v38, %v2781_v14  ;;  %v2827_v46 = vadd.f32 %v2826_v25, %v2825_v13  ;;  %v3667_v14 = vld [vmem:[%s4122_s17] sm:$0xff] }
 0x89b   : > { %v2842_v21 = vrot.slane %v2841_v62, 2  ;;  %v2846_v28 = vrot.slane %v2770_v1, 4  ;;  %v2838_v27 = vrot.slane %v2837_v42, 1  ;;  %v2879_v45 = vadd.f32 %v2833_v23, %v4546_v57 }
 0x89c   : > { %v2788_v3 = vrot.slane %v2787_v58, 2  ;;  %v2792_v29 = vrot.slane %v2761_v39, 4  ;;  %v2746_v44 = vpop.permute.xlu0 %2745  ;;  %v2784_v33 = vrot.slane %v2783_v36, 1  ;;  %v2878_v53 = vadd.f32 %v2827_v46, %v4548_v18  ;;  %v3670_v46 = vld [vmem:[%s4122_s17 + $0x30] sm:$0xff] }
 0x89d   : > { %v2843_v59 = vadd.f32 %v2842_v21, %v2841_v62  ;;  %v2847_v49 = vadd.f32 %v2846_v28, %v2770_v1  ;;  %v2771_v5 = vmul.f32 %v3665_v7, %v2746_v44  ;;  %v2701_v37 = vpop.permute.xlu1 %2700  ;;  %v2839_v17 = vadd.f32 %v2838_v27, %v2837_v42 }
 0x89e   : > { %v2793_v50 = vadd.f32 %v2792_v29, %v2761_v39  ;;  %v2789_v15 = vadd.f32 %v2788_v3, %v2787_v58  ;;  %v2762_v54 = vmul.f32 %v3666_v0, %v2701_v37  ;;  %v2785_v47 = vadd.f32 %v2784_v33, %v2783_v36  ;;  %v3669_v39 = vld [vmem:[%s4122_s17 + $0x70] sm:$0xff] }
 0x89f   : > { %v2852_v6 = vrot.slane %v2771_v5, 4  ;;  %v2844_v20 = vrot.slane %v2843_v59, 1  ;;  %v2848_v4 = vrot.slane %v2847_v49, 2  ;;  %v4884_v9 = vsel %vm1030_vm0, %v2879_v45, %v2878_v53 }
 0x8a0   : > { %v2681_v61 = vpop.permute.xlu0 %2680  ;;  %v2794_v19 = vrot.slane %v2793_v50, 2  ;;  %v2798_v13 = vrot.slane %v2762_v54, 4  ;;  %v2790_v56 = vrot.slane %v2789_v15, 1  ;;  %v4887_v16 = vadd.f32 %v2839_v17, %v4550_v10 }
 0x8a1   : > { %v2853_v41 = vadd.f32 %v2852_v6, %v2771_v5  ;;  %v2706_v51 = vpop.permute.xlu1 %2705  ;;  %v2758_v55 = vmul.f32 %v3667_v14, %v2681_v61  ;;  %v2845_v42 = vadd.f32 %v2844_v20, %v2843_v59  ;;  %v2849_v62 = vadd.f32 %v2848_v4, %v2847_v49  ;;  %v3672_v61 = vld [vmem:[%s4122_s17 + $0x38] sm:$0xff] }
 0x8a2   : > { %v2763_v57 = vmul.f32 %v3668_v35, %v2706_v51  ;;  %v2799_v25 = vadd.f32 %v2798_v13, %v2762_v54  ;;  %v2795_v34 = vadd.f32 %v2794_v19, %v2793_v50  ;;  %v2871_v21 = vadd.f32 %v2785_v47, %v4508_v52 }
 0x8a3   : > { %v2854_v18 = vrot.slane %v2853_v41, 2  ;;  %v2774_v38 = vrot.slane %v2758_v55, 4  ;;  %v2791_v28 = vadd.f32 %v2790_v56, %v2789_v15  ;;  %v2881_v49 = vadd.f32 %v2845_v42, %v4552_v43  ;;  %v3671_v15 = vld [vmem:[%s4122_s17 + $0x78] sm:$0xff]  ;;  %s3865_s17 = smov [#allocation10]  }
 0x8a4   : > { %v2751_v31 = vpop.permute.xlu0 %2750  ;;  %v2804_v8 = vrot.slane %v2763_v57, 4  ;;  %v2800_v58 = vrot.slane %v2799_v25, 2  ;;  %v2850_v7 = vrot.slane %v2849_v62, 1  ;;  %v2796_v33 = vrot.slane %v2795_v34, 1  ;;  %s3787_s25 = sshll.u32 %s3865_s17, 4  ;;  %s3788_s25 = int_to_ptr.vmem [resolvable:$false] %s3787_s25 }
 0x8a5   : > { %v2711_v1 = vpop.permute.xlu1 %2710  ;;  %v2775_v40 = vadd.f32 %v2774_v38, %v2758_v55  ;;  %v2772_v36 = vmul.f32 %v3669_v39, %v2751_v31  ;;  %v2855_v29 = vadd.f32 %v2854_v18, %v2853_v41  ;;  %s3789_s6 = scalar_lea.vmem %s3788_s25, 512  ;;  %p3790_p2 = scmp.lt.s32.totalorder %s4926_s23, %s3788_s25 }
 0x8a6   : > { %v2805_v23 = vadd.f32 %v2804_v8, %v2763_v57  ;;  %v2764_v3 = vmul.f32 %v3670_v46, %v2711_v1  ;;  %v2801_v44 = vadd.f32 %v2800_v58, %v2799_v25  ;;  %v2851_v19 = vadd.f32 %v2850_v7, %v2849_v62  ;;  %p3791_p7 = scmp.lt.s32.totalorder %s3789_s6, %s3783_s11 }
 0x8a7   : > { %v2776_v10 = vrot.slane %v2775_v40, 2  ;;  %v2858_v27 = vrot.slane %v2772_v36, 4  ;;  %v2856_v20 = vrot.slane %v2855_v29, 1  ;;  %v2797_v55 = vadd.f32 %v2796_v33, %v2795_v34 }
 0x8a8   : > { %v2756_v59 = vpop.permute.xlu0 %2755  ;;  %v2806_v5 = vrot.slane %v2805_v23, 2  ;;  %v2810_v37 = vrot.slane %v2764_v3, 4  ;;  %v2802_v53 = vrot.slane %v2801_v44, 1  ;;  %v2872_v57 = vadd.f32 %v2791_v28, %v4514_v32  ;;  %p3792_p0 = por %p3791_p7, %p3790_p2 }
 0x8a9   : > { %v2716_v50 = vpop.permute.xlu1 %2715  ;;  %v2777_v6 = vadd.f32 %v2776_v10, %v2775_v40  ;;  %v2859_v52 = vadd.f32 %v2858_v27, %v2772_v36  ;;  %v2773_v45 = vmul.f32 %v3671_v15, %v2756_v59  ;;  %v2857_v31 = vadd.f32 %v2856_v20, %v2855_v29 }
 0x8aa   : > { %v2807_v0 = vadd.f32 %v2806_v5, %v2805_v23  ;;  %v2811_v54 = vadd.f32 %v2810_v37, %v2764_v3  ;;  %v2765_v17 = vmul.f32 %v3672_v61, %v2716_v50  ;;  %v2803_v18 = vadd.f32 %v2802_v53, %v2801_v44  ;;  %p3793_p5 = pnand %p3792_p0, %p3786_p12 }
 0x8ab   : > { %v2778_v4 = vrot.slane %v2777_v6, 1  ;;  %v2860_v41 = vrot.slane %v2859_v52, 2  ;;  %v2864_v51 = vrot.slane %v2773_v45, 4  ;;  %v2882_v58 = vadd.f32 %v2851_v19, %v4554_v11 }
 0x8ac   : > { %v2808_v43 = vrot.slane %v2807_v0, 1  ;;  %v2812_v13 = vrot.slane %v2811_v54, 2  ;;  %v2816_v14 = vrot.slane %v2765_v17, 4  ;;  %v2873_v34 = vadd.f32 %v2797_v55, %v4521_v48 }
 0x8ad   : > { %v2779_v47 = vadd.f32 %v2778_v4, %v2777_v6  ;;  %v2861_v56 = vadd.f32 %v2860_v41, %v2859_v52  ;;  %v2865_v35 = vadd.f32 %v2864_v51, %v2773_v45  ;;  %v2874_v32 = vadd.f32 %v2803_v18, %v4525_v2 }
 0x8ae   : > { %v2813_v25 = vadd.f32 %v2812_v13, %v2811_v54  ;;  %v2817_v38 = vadd.f32 %v2816_v14, %v2765_v17  ;;  %v2809_v62 = vadd.f32 %v2808_v43, %v2807_v0  ;;  %v2910_v11 = vsel %vm1032_vm1, %v4887_v16, %v4884_v9 }
 0x8af   : > { %v2870_v42 = vadd.f32 %v2779_v47, %v4510_v30  ;;  %v2862_v8 = vrot.slane %v2861_v56, 1  ;;  %v2866_v1 = vrot.slane %v2865_v35, 2  ;;  %v2883_v29 = vadd.f32 %v2857_v31, %v4559_v24 }
 0x8b0   : > { %v2814_v40 = vrot.slane %v2813_v25, 1  ;;  %v2818_v39 = vrot.slane %v2817_v38, 2  ;;  %v2875_v10 = vadd.f32 %v2809_v62, %v4527_v60  ;;  %v2911_v59 = vsel %vm1034_vm2, %v2881_v49, %v2910_v11 }
 0x8b1   : > { %v2902_v36 = vsel %vm1030_vm0, %v2871_v21, %v2870_v42  ;;  %v2863_v23 = vadd.f32 %v2862_v8, %v2861_v56  ;;  %v2867_v46 = vadd.f32 %v2866_v1, %v2865_v35  ;;  %v2912_v24 = vsel %vm1036_vm3, %v2882_v58, %v2911_v59 }
 0x8b2   : > { %v2903_v28 = vsel %vm1032_vm1, %v2872_v57, %v2902_v36  ;;  %v2815_v30 = vadd.f32 %v2814_v40, %v2813_v25  ;;  %v2819_v3 = vadd.f32 %v2818_v39, %v2817_v38  ;;  %v2913_v60 = vsel %vm1038_vm4, %v2883_v29, %v2912_v24 }
 0x8b3   : > { %v2904_v48 = vsel %vm1034_vm2, %v2873_v34, %v2903_v28  ;;  %v2868_v44 = vrot.slane %v2867_v46, 1  ;;  %v2884_v2 = vadd.f32 %v2863_v23, %v4565_v63 }
 0x8b4   : > { %v2905_v21 = vsel %vm1036_vm3, %v2874_v32, %v2904_v48  ;;  %v2820_v27 = vrot.slane %v2819_v3, 1  ;;  %v2876_v7 = vadd.f32 %v2815_v30, %v4530_v22 }
 0x8b5   : > { %v2869_v5 = vadd.f32 %v2868_v44, %v2867_v46  ;;  %v2906_v9 = vsel %vm1038_vm4, %v2875_v10, %v2905_v21  ;;  %v2914_v49 = vsel %vm1040_vm5, %v2884_v2, %v2913_v60 }
 0x8b6   : > { %v2821_v16 = vadd.f32 %v2820_v27, %v2819_v3  ;;  %v2907_v37 = vsel %vm1040_vm5, %v2876_v7, %v2906_v9 }
 0x8b7   : > { %v2885_v63 = vadd.f32 %v2869_v5, %v4569_v26 }
 0x8b8   : > { %v2877_v22 = vadd.f32 %v2821_v16, %v4539_v12 }
 0x8b9   : > { %v2915_v50 = vsel %vm1042_vm6, %v2885_v63, %v2914_v49 }
 0x8ba   : > { %2919 = vst [vmem:[%s334_s30 + $0x8] sm:$0xff] %v2915_v50  ;;  %v2908_v26 = vsel %vm1042_vm6, %v2877_v22, %v2907_v37 }
 0x8bb   : > { %2918 = vst [vmem:[%s334_s30] sm:$0xff] %v2908_v26 }
 0x8bc   : > { %3796 = shalt.err (!%p3793_p5)
}
 0x8bd   : > { %s3797_s16 = scalar_lea.hbm %s4924_s24, 256  ;;  %s3801_s26 = scalar_lea.hbm %s4977_s5, 512 }
 0x8be   : > { %p3798_p9 = scmp.ne.s32.totalorder %s4924_s24, %s3797_s16  ;;  %p3802_p11 = scmp.lt.s32.totalorder %s4924_s24, %s4977_s5 }
 0x8bf   : > { %p3803_p6 = scmp.lt.s32.totalorder %s3801_s26, %s3797_s16 }
 0x8c0   : > { %p3799_p10 = pnand %p3798_p9, %p5009_p13 }
 0x8c1   : > { %p3804_p4 = por %p3803_p6, %p3802_p11 }
 0x8c2   : > { %p3800_p8 = pneg %p3799_p10 }
 0x8c4   : > { %p3805_p3 = pnand %p3804_p4, %p3800_p8 }
 0x8c6   : > { %3808 = shalt.err (!%p3805_p3)
}
 0x8c7   : > { %s3866_s9 = smov 128   ;;  %s3867_s27 = smov 8  }
 0x8c8   : > { %3384 = dma.vmem_to_hbm [thread:$0]  (%p5009_p13), %s4926_s23, 256, %s4924_s24, %s2921_s29, %s3866_s9, %s3866_s9, %s3867_s27  }
 0x8c9 PF: > { %s2949_s28 = sand.u32 1, %s3843_s18   ;;  %p5010_p1 = scmp.ne.s32.totalorder %s4998_s10, 0 }
 0x8ca   : > { %p5011_p12 = scmp.ge.s32.totalorder %s3855_s21, 2  ;;  %s2950_s30 = scalar_lea.sflag [#allocation4], %s2949_s28 }
 0x8cc   : > { %p3401_p2 = pnand %p5011_p12, %p5010_p1 }
 0x8ce   : > { %p3402_p7 = pneg %p3401_p2 }
 0x8d0   : > { %3838 = dma.done.wait (%p3402_p7), %s2950_s30, 256  }
 0x8d1   : > { %3840 = vsyncadd (%p3402_p7), %s2950_s30, 4294967040  ;;  %s5012_s12 = sld [smem:[#allocation15_spill]]  ;;  %p22_p0 = scmp.ge.s32.totalorder %s3919_s22, 4  }
 0x8d2   : > { %s5013_s20 = sld [smem:[#allocation16_spill]]  ;;  %s5014_s18 = smov %s3847_s19 }
 0x8d3   : > { %s5016_s21 = smov %s3919_s22  ;;  %24 = sbr.rel (!%p22_p0) target bundleno = 10 (0xa), region = 116 }
 0x8d7   : > { %s5015_s19 = smov %s5012_s12 }
 0x8d8   :  { %2955 = vsyncpa [#allocation3], 1 }
 0x8d9   :  { %2957 = vsyncpa [#allocation3 + $0x1], 1 }
 0x8da   :  { %2958 = vsyncpa [#allocation6], 1 }
 0x8db   :  { %2960 = vsyncpa [#allocation6 + $0x1], 1 }
 0x8dc   :  { %2961 = vsyncpa [#allocation9], 1 }
 0x8dd   :  { %2962 = vsyncpa [#allocation4], 1 }
 0x8de   :  { %2964 = vsyncpa [#allocation4 + $0x1], 1 }

</bundles_post_ra>
